<compile_context>
chip_gen: v7x
topology: tpu7x:2x2x1
jax: 0.10.0
libtpu: 0.0.40
codegen_flags: <defaults>
</compile_context>

<pallas_src>
import jax
import jax.numpy as jnp
from jax.experimental import pallas as pl
from jax.experimental.pallas import tpu as pltpu

# ---- small synthetic CLIP-text config (lane-dense stand-in for CLIP-L) ------
B = 2           # batch
S = 8           # max_length (stand-in for 77)
D = 128         # hidden size (stand-in for 768) -- multiple of 128 lanes
H = 4           # attention heads
HD = D // H     # head dim
I = 4 * D       # MLP intermediate
L = 2           # encoder layers (stand-in for 12)
VOCAB = 64
EPS = 1e-5

_PER_LAYER_NAMES = ("ln1w", "ln1b", "wq", "bq", "wk", "bk", "wv", "bv",
                    "wo", "bo", "ln2w", "ln2b", "w1", "b1", "w2", "b2")


def _layernorm(x, w, b):
    mu = jnp.mean(x, axis=-1, keepdims=True)
    var = jnp.mean((x - mu) ** 2, axis=-1, keepdims=True)
    return (x - mu) * jax.lax.rsqrt(var + EPS) * w + b


def _layer_math(x, ws):
    """One CLIP encoder layer on the full [B, S, D] slab (pre-LN, causal attn).

    bf16 matmul operands, f32 accumulation; LN / softmax / quick-GELU in f32.
    """
    (ln1w, ln1b, wq, bq, wk, bk, wv, bv, wo, bo,
     ln2w, ln2b, w1, b1, w2, b2) = ws

    # --- self-attention block ---
    xn = _layernorm(x, ln1w, ln1b)
    xnb = xn.astype(jnp.bfloat16)
    q = jnp.dot(xnb, wq, preferred_element_type=jnp.float32) + bq
    k = jnp.dot(xnb, wk, preferred_element_type=jnp.float32) + bk
    v = jnp.dot(xnb, wv, preferred_element_type=jnp.float32) + bv
    qb = q.astype(jnp.bfloat16)
    kb = k.astype(jnp.bfloat16)
    vb = v.astype(jnp.bfloat16)

    scale = jnp.float32(1.0 / (HD ** 0.5))
    # causal mask hoisted out of the head loop (computed once per layer body)
    row = jax.lax.broadcasted_iota(jnp.int32, (S, S), 0)
    col = jax.lax.broadcasted_iota(jnp.int32, (S, S), 1)
    causal = (col <= row)[None]                                   # (1, S, S)

    ctxs = []
    for h in range(H):                        # static unroll; tiny head matmuls
        sl = slice(h * HD, (h + 1) * HD)
        s = jnp.einsum('bqd,bkd->bqk', qb[..., sl], kb[..., sl],
                       preferred_element_type=jnp.float32) * scale
        s = jnp.where(causal, s, jnp.float32(-1e9))
        m = jnp.max(s, axis=-1, keepdims=True)
        p = jnp.exp(s - m)
        p = p / jnp.sum(p, axis=-1, keepdims=True)
        ctxs.append(jnp.einsum('bqk,bkd->bqd', p.astype(jnp.bfloat16),
                               vb[..., sl],
                               preferred_element_type=jnp.float32))
    ctx = jnp.concatenate(ctxs, axis=-1)                          # (B, S, D)
    # single combined output projection (no per-head partial wo matmuls)
    attn = jnp.dot(ctx.astype(jnp.bfloat16), wo,
                   preferred_element_type=jnp.float32) + bo
    x = x + attn

    # --- MLP block (quick_gelu) ---
    xn2 = _layernorm(x, ln2w, ln2b)
    hid = jnp.dot(xn2.astype(jnp.bfloat16), w1,
                  preferred_element_type=jnp.float32) + b1
    hid = hid * jax.nn.sigmoid(1.702 * hid)
    x = x + jnp.dot(hid.astype(jnp.bfloat16), w2,
                    preferred_element_type=jnp.float32) + b2
    return x


# ------------------------------ Pallas kernel --------------------------------
def fused_clip_kernel(x_ref, onehot_ref, lnfw_ref, lnfb_ref, *refs):
    """Grid axis 0 = layer index; activations live in the VMEM scratch."""
    w_refs = refs[:len(_PER_LAYER_NAMES)]
    out_ref = refs[len(_PER_LAYER_NAMES)]
    x_vmem = refs[len(_PER_LAYER_NAMES) + 1]

    l = pl.program_id(0)

    @pl.when(l == 0)
    def _():                                   # load embeddings once
        x_vmem[...] = x_ref[...]

    ws = tuple(r[0] for r in w_refs)           # drop the leading layer dim
    x_new = _layer_math(x_vmem[...], ws)
    x_vmem[...] = x_new

    @pl.when(l == pl.num_programs(0) - 1)
    def _():                                   # fused final LN + EOS pooling
        xf = _layernorm(x_new, lnfw_ref[...], lnfb_ref[...])
        out_ref[...] = jnp.sum(onehot_ref[...][:, :, None] * xf, axis=1)


def _layer_spec(arr):
    n = arr.ndim - 1
    return pl.BlockSpec((1,) + arr.shape[1:], lambda l, n=n: (l,) + (0,) * n)


def _full_spec(arr):
    n = arr.ndim
    return pl.BlockSpec(arr.shape, lambda l, n=n: (0,) * n)


def clip_text_pooled(x_emb, eos_onehot, params):
    """Fused transformer encoder + final LN + EOS pooling in one pallas_call."""
    stacked = [params[n] for n in _PER_LAYER_NAMES]
    args = [x_emb, eos_onehot, params["lnf_w"], params["lnf_b"]] + stacked
    in_specs = ([pl.BlockSpec((B, S, D), lambda l: (0, 0, 0)),
                 _full_spec(eos_onehot),
                 _full_spec(params["lnf_w"]),
                 _full_spec(params["lnf_b"])]
                + [_layer_spec(w) for w in stacked])
    return pl.pallas_call(
        fused_clip_kernel,
        out_shape=jax.ShapeDtypeStruct((B, D), jnp.float32),
        grid_spec=pltpu.PrefetchScalarGridSpec(
            num_scalar_prefetch=0,
            grid=(L,),
            in_specs=in_specs,
            out_specs=pl.BlockSpec((B, D), lambda l: (0, 0)),
            scratch_shapes=[pltpu.VMEM((B, S, D), jnp.float32)]),
        compiler_params=pltpu.CompilerParams(
            dimension_semantics=("arbitrary",),      # layer axis carries state
            vmem_limit_bytes=48 * 1024 * 1024),      # safe on v7x's 64 MiB too
    )(*args)


# ------------------------------ model wrapper ---------------------------------
def init_params(key):
    ks = jax.random.split(key, 8)
    scale = 0.02

    def w(k, shape):  # bf16 weight storage (halves weight DMA, native MXU path)
        return (scale * jax.random.normal(k, shape, jnp.float32)).astype(jnp.bfloat16)

    return {
        "tok_emb": scale * jax.random.normal(ks[0], (VOCAB, D), jnp.float32),
        "pos_emb": scale * jax.random.normal(ks[1], (S, D), jnp.float32),
        "lnf_w": jnp.ones((1, D), jnp.float32),
        "lnf_b": jnp.zeros((1, D), jnp.float32),
        # per-layer weights stacked along a leading L axis (weight streaming)
        "ln1w": jnp.ones((L, 1, D), jnp.float32),
        "ln1b": jnp.zeros((L, 1, D), jnp.float32),
        "wq": w(ks[2], (L, D, D)),
        "bq": jnp.zeros((L, 1, D), jnp.float32),
        "wk": w(ks[3], (L, D, D)),
        "bk": jnp.zeros((L, 1, D), jnp.float32),
        "wv": w(ks[4], (L, D, D)),
        "bv": jnp.zeros((L, 1, D), jnp.float32),
        "wo": w(ks[5], (L, D, D)),
        "bo": jnp.zeros((L, 1, D), jnp.float32),
        "ln2w": jnp.ones((L, 1, D), jnp.float32),
        "ln2b": jnp.zeros((L, 1, D), jnp.float32),
        "w1": w(ks[6], (L, D, I)),
        "b1": jnp.zeros((L, 1, I), jnp.float32),
        "w2": w(ks[7], (L, I, D)),
        "b2": jnp.zeros((L, 1, D), jnp.float32),
    }


def frozen_clip_embedder_pooled(tokens, params):
    """Equivalent of FrozenCLIPEmbedder(layer='pooled').forward on token ids.

    # TODO(synk): the HF CLIPTokenizer (text -> token ids) has no Pallas/JAX
    # equivalent; token ids are taken directly as input.
    """
    # embedding glue (gather) in plain JAX
    x = jnp.take(params["tok_emb"], tokens, axis=0) + params["pos_emb"][None]
    # pooler_output position = argmax token id (the EOS token, as in HF CLIP)
    eos_pos = jnp.argmax(tokens, axis=-1)
    eos_onehot = jax.nn.one_hot(eos_pos, S, dtype=jnp.float32)
    # fused encoder + final LN + pooling -> (B, D)
    return clip_text_pooled(x, eos_onehot, params)


def reference_pooled(tokens, params):
    x = jnp.take(params["tok_emb"], tokens, axis=0) + params["pos_emb"][None]
    for l in range(L):
        ws = tuple(params[n][l] for n in _PER_LAYER_NAMES)
        x = _layer_math(x, ws)
    x = _layernorm(x, params["lnf_w"], params["lnf_b"])
    eos_pos = jnp.argmax(tokens, axis=-1)
    return x[jnp.arange(tokens.shape[0]), eos_pos]


if __name__ == "__main__":
    key = jax.random.PRNGKey(0)
    pkey, tkey = jax.random.split(key)
    params = init_params(pkey)

    # deterministic synthetic token ids; place EOS (highest id) per sequence
    tokens = jax.random.randint(tkey, (B, S), 0, VOCAB - 1, dtype=jnp.int32)
    tokens = tokens.at[0, 5].set(VOCAB - 1)
    tokens = tokens.at[1, 3].set(VOCAB - 1)

    z = jax.block_until_ready(frozen_clip_embedder_pooled(tokens, params))
    assert z.shape == (B, D), z.shape

    z_ref = jax.block_until_ready(reference_pooled(tokens, params))
    assert jnp.allclose(z, z_ref, atol=2e-3, rtol=2e-3), (
        float(jnp.max(jnp.abs(z - z_ref))))

    print("KERNEL_OK")
</pallas_src>

<mosaic_0001>
module attributes {stable_mosaic.version = 11 : i64} {
  func.func @fused_clip_kernel(%arg0: i32, %arg1: memref<2x8x128xf32, #tpu.memory_space<vmem>>, %arg2: memref<2x8xf32, #tpu.memory_space<vmem>>, %arg3: memref<1x128xf32, #tpu.memory_space<vmem>>, %arg4: memref<1x128xf32, #tpu.memory_space<vmem>>, %arg5: memref<1x1x128xf32, #tpu.memory_space<vmem>>, %arg6: memref<1x1x128xf32, #tpu.memory_space<vmem>>, %arg7: memref<1x128x128xbf16, #tpu.memory_space<vmem>>, %arg8: memref<1x1x128xf32, #tpu.memory_space<vmem>>, %arg9: memref<1x128x128xbf16, #tpu.memory_space<vmem>>, %arg10: memref<1x1x128xf32, #tpu.memory_space<vmem>>, %arg11: memref<1x128x128xbf16, #tpu.memory_space<vmem>>, %arg12: memref<1x1x128xf32, #tpu.memory_space<vmem>>, %arg13: memref<1x128x128xbf16, #tpu.memory_space<vmem>>, %arg14: memref<1x1x128xf32, #tpu.memory_space<vmem>>, %arg15: memref<1x1x128xf32, #tpu.memory_space<vmem>>, %arg16: memref<1x1x128xf32, #tpu.memory_space<vmem>>, %arg17: memref<1x128x512xbf16, #tpu.memory_space<vmem>>, %arg18: memref<1x1x512xf32, #tpu.memory_space<vmem>>, %arg19: memref<1x512x128xbf16, #tpu.memory_space<vmem>>, %arg20: memref<1x1x128xf32, #tpu.memory_space<vmem>>, %arg21: memref<2x128xf32, #tpu.memory_space<vmem>>, %arg22: memref<2x8x128xf32, #tpu.memory_space<vmem>>) attributes {dimension_semantics = [#tpu.dimension_semantics<arbitrary>], iteration_bounds = array<i64: 2>, scalar_prefetch = 0 : i64, scratch_operands = 1 : i64, tpu.core_type = #tpu.core_type<tc>, window_params = [{pipeline_mode = #tpu.pipeline_mode<synchronous>, transform_indices = @transform_0, window_bounds = array<i64: 2, 8, 128>}, {pipeline_mode = #tpu.pipeline_mode<synchronous>, transform_indices = @transform_1, window_bounds = array<i64: 2, 8>}, {pipeline_mode = #tpu.pipeline_mode<synchronous>, transform_indices = @transform_2, window_bounds = array<i64: 1, 128>}, {pipeline_mode = #tpu.pipeline_mode<synchronous>, transform_indices = @transform_3, window_bounds = array<i64: 1, 128>}, {transform_indices = @transform_4, window_bounds = array<i64: 1, 1, 128>}, {transform_indices = @transform_5, window_bounds = array<i64: 1, 1, 128>}, {transform_indices = @transform_6, window_bounds = array<i64: 1, 128, 128>}, {transform_indices = @transform_7, window_bounds = array<i64: 1, 1, 128>}, {transform_indices = @transform_8, window_bounds = array<i64: 1, 128, 128>}, {transform_indices = @transform_9, window_bounds = array<i64: 1, 1, 128>}, {transform_indices = @transform_10, window_bounds = array<i64: 1, 128, 128>}, {transform_indices = @transform_11, window_bounds = array<i64: 1, 1, 128>}, {transform_indices = @transform_12, window_bounds = array<i64: 1, 128, 128>}, {transform_indices = @transform_13, window_bounds = array<i64: 1, 1, 128>}, {transform_indices = @transform_14, window_bounds = array<i64: 1, 1, 128>}, {transform_indices = @transform_15, window_bounds = array<i64: 1, 1, 128>}, {transform_indices = @transform_16, window_bounds = array<i64: 1, 128, 512>}, {transform_indices = @transform_17, window_bounds = array<i64: 1, 1, 512>}, {transform_indices = @transform_18, window_bounds = array<i64: 1, 512, 128>}, {transform_indices = @transform_19, window_bounds = array<i64: 1, 1, 128>}, {pipeline_mode = #tpu.pipeline_mode<synchronous>, transform_indices = @transform_20, window_bounds = array<i64: 2, 128>}]} {
    %c0_i32 = arith.constant 0 : i32
    %0 = arith.cmpi eq, %arg0, %c0_i32 : i32
    %1 = arith.extui %0 : i1 to i32
    %c0_i32_0 = arith.constant 0 : i32
    %2 = arith.cmpi ne, %1, %c0_i32_0 : i32
    scf.if %2 {
      %c0_96 = arith.constant 0 : index
      %c0_97 = arith.constant 0 : index
      %c0_98 = arith.constant 0 : index
      %218 = vector.load %arg1[%c0_96, %c0_97, %c0_98] : memref<2x8x128xf32, #tpu.memory_space<vmem>>, vector<2x8x128xf32>
      %c0_99 = arith.constant 0 : index
      %c0_100 = arith.constant 0 : index
      %c0_101 = arith.constant 0 : index
      %219 = vector.load %arg22[%c0_99, %c0_100, %c0_101] : memref<2x8x128xf32, #tpu.memory_space<vmem>>, vector<2x8x128xf32>
      tpu.vector_store %arg22[%c0_99, %c0_100, %c0_101], %218 {strides = array<i32>} : memref<2x8x128xf32, #tpu.memory_space<vmem>>, vector<2x8x128xf32>,
    } else {
    }
    %c0 = arith.constant 0 : index
    %c0_1 = arith.constant 0 : index
    %c0_2 = arith.constant 0 : index
    %3 = vector.load %arg5[%c0, %c0_1, %c0_2] : memref<1x1x128xf32, #tpu.memory_space<vmem>>, vector<1x1x128xf32>
    %4 = vector.shape_cast %3 : vector<1x1x128xf32> to vector<1x128xf32>
    %c0_3 = arith.constant 0 : index
    %c0_4 = arith.constant 0 : index
    %c0_5 = arith.constant 0 : index
    %5 = vector.load %arg6[%c0_3, %c0_4, %c0_5] : memref<1x1x128xf32, #tpu.memory_space<vmem>>, vector<1x1x128xf32>
    %6 = vector.shape_cast %5 : vector<1x1x128xf32> to vector<1x128xf32>
    %c0_6 = arith.constant 0 : index
    %c0_7 = arith.constant 0 : index
    %c0_8 = arith.constant 0 : index
    %7 = vector.load %arg7[%c0_6, %c0_7, %c0_8] : memref<1x128x128xbf16, #tpu.memory_space<vmem>>, vector<1x128x128xbf16>
    %8 = vector.shape_cast %7 : vector<1x128x128xbf16> to vector<128x128xbf16>
    %c0_9 = arith.constant 0 : index
    %c0_10 = arith.constant 0 : index
    %c0_11 = arith.constant 0 : index
    %9 = vector.load %arg8[%c0_9, %c0_10, %c0_11] : memref<1x1x128xf32, #tpu.memory_space<vmem>>, vector<1x1x128xf32>
    %10 = vector.shape_cast %9 : vector<1x1x128xf32> to vector<1x128xf32>
    %c0_12 = arith.constant 0 : index
    %c0_13 = arith.constant 0 : index
    %c0_14 = arith.constant 0 : index
    %11 = vector.load %arg9[%c0_12, %c0_13, %c0_14] : memref<1x128x128xbf16, #tpu.memory_space<vmem>>, vector<1x128x128xbf16>
    %12 = vector.shape_cast %11 : vector<1x128x128xbf16> to vector<128x128xbf16>
    %c0_15 = arith.constant 0 : index
    %c0_16 = arith.constant 0 : index
    %c0_17 = arith.constant 0 : index
    %13 = vector.load %arg10[%c0_15, %c0_16, %c0_17] : memref<1x1x128xf32, #tpu.memory_space<vmem>>, vector<1x1x128xf32>
    %14 = vector.shape_cast %13 : vector<1x1x128xf32> to vector<1x128xf32>
    %c0_18 = arith.constant 0 : index
    %c0_19 = arith.constant 0 : index
    %c0_20 = arith.constant 0 : index
    %15 = vector.load %arg11[%c0_18, %c0_19, %c0_20] : memref<1x128x128xbf16, #tpu.memory_space<vmem>>, vector<1x128x128xbf16>
    %16 = vector.shape_cast %15 : vector<1x128x128xbf16> to vector<128x128xbf16>
    %c0_21 = arith.constant 0 : index
    %c0_22 = arith.constant 0 : index
    %c0_23 = arith.constant 0 : index
    %17 = vector.load %arg12[%c0_21, %c0_22, %c0_23] : memref<1x1x128xf32, #tpu.memory_space<vmem>>, vector<1x1x128xf32>
    %18 = vector.shape_cast %17 : vector<1x1x128xf32> to vector<1x128xf32>
    %c0_24 = arith.constant 0 : index
    %c0_25 = arith.constant 0 : index
    %c0_26 = arith.constant 0 : index
    %19 = vector.load %arg13[%c0_24, %c0_25, %c0_26] : memref<1x128x128xbf16, #tpu.memory_space<vmem>>, vector<1x128x128xbf16>
    %20 = vector.shape_cast %19 : vector<1x128x128xbf16> to vector<128x128xbf16>
    %c0_27 = arith.constant 0 : index
    %c0_28 = arith.constant 0 : index
    %c0_29 = arith.constant 0 : index
    %21 = vector.load %arg14[%c0_27, %c0_28, %c0_29] : memref<1x1x128xf32, #tpu.memory_space<vmem>>, vector<1x1x128xf32>
    %22 = vector.shape_cast %21 : vector<1x1x128xf32> to vector<1x128xf32>
    %c0_30 = arith.constant 0 : index
    %c0_31 = arith.constant 0 : index
    %c0_32 = arith.constant 0 : index
    %23 = vector.load %arg15[%c0_30, %c0_31, %c0_32] : memref<1x1x128xf32, #tpu.memory_space<vmem>>, vector<1x1x128xf32>
    %24 = vector.shape_cast %23 : vector<1x1x128xf32> to vector<1x128xf32>
    %c0_33 = arith.constant 0 : index
    %c0_34 = arith.constant 0 : index
    %c0_35 = arith.constant 0 : index
    %25 = vector.load %arg16[%c0_33, %c0_34, %c0_35] : memref<1x1x128xf32, #tpu.memory_space<vmem>>, vector<1x1x128xf32>
    %26 = vector.shape_cast %25 : vector<1x1x128xf32> to vector<1x128xf32>
    %c0_36 = arith.constant 0 : index
    %c0_37 = arith.constant 0 : index
    %c0_38 = arith.constant 0 : index
    %27 = vector.load %arg17[%c0_36, %c0_37, %c0_38] : memref<1x128x512xbf16, #tpu.memory_space<vmem>>, vector<1x128x512xbf16>
    %28 = vector.shape_cast %27 : vector<1x128x512xbf16> to vector<128x512xbf16>
    %c0_39 = arith.constant 0 : index
    %c0_40 = arith.constant 0 : index
    %c0_41 = arith.constant 0 : index
    %29 = vector.load %arg18[%c0_39, %c0_40, %c0_41] : memref<1x1x512xf32, #tpu.memory_space<vmem>>, vector<1x1x512xf32>
    %30 = vector.shape_cast %29 : vector<1x1x512xf32> to vector<1x512xf32>
    %c0_42 = arith.constant 0 : index
    %c0_43 = arith.constant 0 : index
    %c0_44 = arith.constant 0 : index
    %31 = vector.load %arg19[%c0_42, %c0_43, %c0_44] : memref<1x512x128xbf16, #tpu.memory_space<vmem>>, vector<1x512x128xbf16>
    %32 = vector.shape_cast %31 : vector<1x512x128xbf16> to vector<512x128xbf16>
    %c0_45 = arith.constant 0 : index
    %c0_46 = arith.constant 0 : index
    %c0_47 = arith.constant 0 : index
    %33 = vector.load %arg20[%c0_45, %c0_46, %c0_47] : memref<1x1x128xf32, #tpu.memory_space<vmem>>, vector<1x1x128xf32>
    %34 = vector.shape_cast %33 : vector<1x1x128xf32> to vector<1x128xf32>
    %c0_48 = arith.constant 0 : index
    %c0_49 = arith.constant 0 : index
    %c0_50 = arith.constant 0 : index
    %35 = vector.load %arg22[%c0_48, %c0_49, %c0_50] : memref<2x8x128xf32, #tpu.memory_space<vmem>>, vector<2x8x128xf32>
    %cst = arith.constant dense<0.000000e+00> : vector<2x8xf32>
    %36 = vector.multi_reduction <add>, %35, %cst [2] : vector<2x8x128xf32> to vector<2x8xf32>
    %37 = vector.shape_cast %36 : vector<2x8xf32> to vector<2x8x1xf32>
    %cst_51 = arith.constant 1.280000e+02 : f32
    %38 = vector.broadcast %cst_51 : f32 to vector<2x8x1xf32>
    %39 = arith.divf %37, %38 : vector<2x8x1xf32>
    %40 = vector.broadcast %39 : vector<2x8x1xf32> to vector<2x8x128xf32>
    %41 = arith.subf %35, %40 : vector<2x8x128xf32>
    %42 = arith.mulf %41, %41 : vector<2x8x128xf32>
    %cst_52 = arith.constant dense<0.000000e+00> : vector<2x8xf32>
    %43 = vector.multi_reduction <add>, %42, %cst_52 [2] : vector<2x8x128xf32> to vector<2x8xf32>
    %44 = vector.shape_cast %43 : vector<2x8xf32> to vector<2x8x1xf32>
    %cst_53 = arith.constant 1.280000e+02 : f32
    %45 = vector.broadcast %cst_53 : f32 to vector<2x8x1xf32>
    %46 = arith.divf %44, %45 : vector<2x8x1xf32>
    %47 = vector.broadcast %39 : vector<2x8x1xf32> to vector<2x8x128xf32>
    %48 = arith.subf %35, %47 : vector<2x8x128xf32>
    %cst_54 = arith.constant 9.99999974E-6 : f32
    %49 = vector.broadcast %cst_54 : f32 to vector<2x8x1xf32>
    %50 = arith.addf %46, %49 : vector<2x8x1xf32>
    %51 = math.rsqrt %50 : vector<2x8x1xf32>
    %52 = vector.broadcast %51 : vector<2x8x1xf32> to vector<2x8x128xf32>
    %53 = arith.mulf %48, %52 : vector<2x8x128xf32>
    %54 = vector.shape_cast %4 : vector<1x128xf32> to vector<1x1x128xf32>
    %55 = vector.broadcast %54 : vector<1x1x128xf32> to vector<2x8x128xf32>
    %56 = arith.mulf %53, %55 : vector<2x8x128xf32>
    %57 = vector.shape_cast %6 : vector<1x128xf32> to vector<1x1x128xf32>
    %58 = vector.broadcast %57 : vector<1x1x128xf32> to vector<2x8x128xf32>
    %59 = arith.addf %56, %58 : vector<2x8x128xf32>
    %60 = arith.truncf %59 : vector<2x8x128xf32> to vector<2x8x128xbf16>
    %cst_55 = arith.constant dense<0.000000e+00> : vector<2x8x128xf32>
    %61 = tpu.matmul %60, %8, %cst_55 {dimension_numbers = #tpu.dot_dimension_numbers<[2], [0], [0, 1], [1], [0, 0, 0, 1, 1, 1], [], []>} : vector<2x8x128xbf16>, vector<128x128xbf16>, vector<2x8x128xf32> -> vector<2x8x128xf32>
    %62 = vector.shape_cast %10 : vector<1x128xf32> to vector<1x1x128xf32>
    %63 = vector.broadcast %62 : vector<1x1x128xf32> to vector<2x8x128xf32>
    %64 = arith.addf %61, %63 : vector<2x8x128xf32>
    %cst_56 = arith.constant dense<0.000000e+00> : vector<2x8x128xf32>
    %65 = tpu.matmul %60, %12, %cst_56 {dimension_numbers = #tpu.dot_dimension_numbers<[2], [0], [0, 1], [1], [0, 0, 0, 1, 1, 1], [], []>} : vector<2x8x128xbf16>, vector<128x128xbf16>, vector<2x8x128xf32> -> vector<2x8x128xf32>
    %66 = vector.shape_cast %14 : vector<1x128xf32> to vector<1x1x128xf32>
    %67 = vector.broadcast %66 : vector<1x1x128xf32> to vector<2x8x128xf32>
    %68 = arith.addf %65, %67 : vector<2x8x128xf32>
    %cst_57 = arith.constant dense<0.000000e+00> : vector<2x8x128xf32>
    %69 = tpu.matmul %60, %16, %cst_57 {dimension_numbers = #tpu.dot_dimension_numbers<[2], [0], [0, 1], [1], [0, 0, 0, 1, 1, 1], [], []>} : vector<2x8x128xbf16>, vector<128x128xbf16>, vector<2x8x128xf32> -> vector<2x8x128xf32>
    %70 = vector.shape_cast %18 : vector<1x128xf32> to vector<1x1x128xf32>
    %71 = vector.broadcast %70 : vector<1x1x128xf32> to vector<2x8x128xf32>
    %72 = arith.addf %69, %71 : vector<2x8x128xf32>
    %73 = arith.truncf %64 : vector<2x8x128xf32> to vector<2x8x128xbf16>
    %74 = arith.truncf %68 : vector<2x8x128xf32> to vector<2x8x128xbf16>
    %75 = arith.truncf %72 : vector<2x8x128xf32> to vector<2x8x128xbf16>
    %76 = tpu.iota {dimensions = array<i32: 0>} : vector<8x8xi32>
    %77 = tpu.iota {dimensions = array<i32: 1>} : vector<8x8xi32>
    %78 = arith.cmpi sle, %77, %76 : vector<8x8xi32>
    %79 = vector.shape_cast %78 : vector<8x8xi1> to vector<1x8x8xi1>
    %80 = vector.extract_strided_slice %73 {offsets = [0, 0, 0], sizes = [2, 8, 32], strides = [1, 1, 1]} : vector<2x8x128xbf16> to vector<2x8x32xbf16>
    %81 = vector.extract_strided_slice %74 {offsets = [0, 0, 0], sizes = [2, 8, 32], strides = [1, 1, 1]} : vector<2x8x128xbf16> to vector<2x8x32xbf16>
    "tpu.trace_start"() <{level = 10 : i32, message = "bqd,bkd->bqk"}> : () -> ()
    %cst_58 = arith.constant dense<0.000000e+00> : vector<2x8x8xf32>
    %82 = tpu.matmul %80, %81, %cst_58 {dimension_numbers = #tpu.dot_dimension_numbers<[2], [2], [1], [1], [0, 0, 0, 1, 1, 1], [0], [0]>} : vector<2x8x32xbf16>, vector<2x8x32xbf16>, vector<2x8x8xf32> -> vector<2x8x8xf32>
    "tpu.trace_stop"() : () -> ()
    %cst_59 = arith.constant 0.176776692 : f32
    %83 = vector.broadcast %cst_59 : f32 to vector<2x8x8xf32>
    %84 = arith.mulf %82, %83 : vector<2x8x8xf32>
    %cst_60 = arith.constant -1.000000e+09 : f32
    %85 = vector.shape_cast %79 : vector<1x8x8xi1> to vector<1x8x8xi1>
    %86 = vector.broadcast %85 : vector<1x8x8xi1> to vector<2x8x8xi1>
    %87 = vector.broadcast %cst_60 : f32 to vector<2x8x8xf32>
    %88 = arith.select %86, %84, %87 : vector<2x8x8xi1>, vector<2x8x8xf32>
    %cst_61 = arith.constant dense<0xFF800000> : vector<2x8xf32>
    %89 = vector.multi_reduction <maximumf>, %88, %cst_61 [2] : vector<2x8x8xf32> to vector<2x8xf32>
    %90 = vector.shape_cast %89 : vector<2x8xf32> to vector<2x8x1xf32>
    %91 = vector.broadcast %90 : vector<2x8x1xf32> to vector<2x8x8xf32>
    %92 = arith.subf %88, %91 : vector<2x8x8xf32>
    %93 = math.exp %92 : vector<2x8x8xf32>
    %cst_62 = arith.constant dense<0.000000e+00> : vector<2x8xf32>
    %94 = vector.multi_reduction <add>, %93, %cst_62 [2] : vector<2x8x8xf32> to vector<2x8xf32>
    %95 = vector.shape_cast %94 : vector<2x8xf32> to vector<2x8x1xf32>
    %96 = vector.broadcast %95 : vector<2x8x1xf32> to vector<2x8x8xf32>
    %97 = arith.divf %93, %96 : vector<2x8x8xf32>
    %98 = arith.truncf %97 : vector<2x8x8xf32> to vector<2x8x8xbf16>
    %99 = vector.extract_strided_slice %75 {offsets = [0, 0, 0], sizes = [2, 8, 32], strides = [1, 1, 1]} : vector<2x8x128xbf16> to vector<2x8x32xbf16>
    "tpu.trace_start"() <{level = 10 : i32, message = "bqk,bkd->bqd"}> : () -> ()
    %cst_63 = arith.constant dense<0.000000e+00> : vector<2x8x32xf32>
    %100 = tpu.matmul %98, %99, %cst_63 {dimension_numbers = #tpu.dot_dimension_numbers<[2], [1], [1], [2], [0, 0, 0, 1, 1, 2], [0], [0]>} : vector<2x8x8xbf16>, vector<2x8x32xbf16>, vector<2x8x32xf32> -> vector<2x8x32xf32>
    "tpu.trace_stop"() : () -> ()
    %101 = vector.extract_strided_slice %73 {offsets = [0, 0, 32], sizes = [2, 8, 32], strides = [1, 1, 1]} : vector<2x8x128xbf16> to vector<2x8x32xbf16>
    %102 = vector.extract_strided_slice %74 {offsets = [0, 0, 32], sizes = [2, 8, 32], strides = [1, 1, 1]} : vector<2x8x128xbf16> to vector<2x8x32xbf16>
    "tpu.trace_start"() <{level = 10 : i32, message = "bqd,bkd->bqk"}> : () -> ()
    %cst_64 = arith.constant dense<0.000000e+00> : vector<2x8x8xf32>
    %103 = tpu.matmul %101, %102, %cst_64 {dimension_numbers = #tpu.dot_dimension_numbers<[2], [2], [1], [1], [0, 0, 0, 1, 1, 1], [0], [0]>} : vector<2x8x32xbf16>, vector<2x8x32xbf16>, vector<2x8x8xf32> -> vector<2x8x8xf32>
    "tpu.trace_stop"() : () -> ()
    %cst_65 = arith.constant 0.176776692 : f32
    %104 = vector.broadcast %cst_65 : f32 to vector<2x8x8xf32>
    %105 = arith.mulf %103, %104 : vector<2x8x8xf32>
    %cst_66 = arith.constant -1.000000e+09 : f32
    %106 = vector.shape_cast %79 : vector<1x8x8xi1> to vector<1x8x8xi1>
    %107 = vector.broadcast %106 : vector<1x8x8xi1> to vector<2x8x8xi1>
    %108 = vector.broadcast %cst_66 : f32 to vector<2x8x8xf32>
    %109 = arith.select %107, %105, %108 : vector<2x8x8xi1>, vector<2x8x8xf32>
    %cst_67 = arith.constant dense<0xFF800000> : vector<2x8xf32>
    %110 = vector.multi_reduction <maximumf>, %109, %cst_67 [2] : vector<2x8x8xf32> to vector<2x8xf32>
    %111 = vector.shape_cast %110 : vector<2x8xf32> to vector<2x8x1xf32>
    %112 = vector.broadcast %111 : vector<2x8x1xf32> to vector<2x8x8xf32>
    %113 = arith.subf %109, %112 : vector<2x8x8xf32>
    %114 = math.exp %113 : vector<2x8x8xf32>
    %cst_68 = arith.constant dense<0.000000e+00> : vector<2x8xf32>
    %115 = vector.multi_reduction <add>, %114, %cst_68 [2] : vector<2x8x8xf32> to vector<2x8xf32>
    %116 = vector.shape_cast %115 : vector<2x8xf32> to vector<2x8x1xf32>
    %117 = vector.broadcast %116 : vector<2x8x1xf32> to vector<2x8x8xf32>
    %118 = arith.divf %114, %117 : vector<2x8x8xf32>
    %119 = arith.truncf %118 : vector<2x8x8xf32> to vector<2x8x8xbf16>
    %120 = vector.extract_strided_slice %75 {offsets = [0, 0, 32], sizes = [2, 8, 32], strides = [1, 1, 1]} : vector<2x8x128xbf16> to vector<2x8x32xbf16>
    "tpu.trace_start"() <{level = 10 : i32, message = "bqk,bkd->bqd"}> : () -> ()
    %cst_69 = arith.constant dense<0.000000e+00> : vector<2x8x32xf32>
    %121 = tpu.matmul %119, %120, %cst_69 {dimension_numbers = #tpu.dot_dimension_numbers<[2], [1], [1], [2], [0, 0, 0, 1, 1, 2], [0], [0]>} : vector<2x8x8xbf16>, vector<2x8x32xbf16>, vector<2x8x32xf32> -> vector<2x8x32xf32>
    "tpu.trace_stop"() : () -> ()
    %122 = vector.extract_strided_slice %73 {offsets = [0, 0, 64], sizes = [2, 8, 32], strides = [1, 1, 1]} : vector<2x8x128xbf16> to vector<2x8x32xbf16>
    %123 = vector.extract_strided_slice %74 {offsets = [0, 0, 64], sizes = [2, 8, 32], strides = [1, 1, 1]} : vector<2x8x128xbf16> to vector<2x8x32xbf16>
    "tpu.trace_start"() <{level = 10 : i32, message = "bqd,bkd->bqk"}> : () -> ()
    %cst_70 = arith.constant dense<0.000000e+00> : vector<2x8x8xf32>
    %124 = tpu.matmul %122, %123, %cst_70 {dimension_numbers = #tpu.dot_dimension_numbers<[2], [2], [1], [1], [0, 0, 0, 1, 1, 1], [0], [0]>} : vector<2x8x32xbf16>, vector<2x8x32xbf16>, vector<2x8x8xf32> -> vector<2x8x8xf32>
    "tpu.trace_stop"() : () -> ()
    %cst_71 = arith.constant 0.176776692 : f32
    %125 = vector.broadcast %cst_71 : f32 to vector<2x8x8xf32>
    %126 = arith.mulf %124, %125 : vector<2x8x8xf32>
    %cst_72 = arith.constant -1.000000e+09 : f32
    %127 = vector.shape_cast %79 : vector<1x8x8xi1> to vector<1x8x8xi1>
    %128 = vector.broadcast %127 : vector<1x8x8xi1> to vector<2x8x8xi1>
    %129 = vector.broadcast %cst_72 : f32 to vector<2x8x8xf32>
    %130 = arith.select %128, %126, %129 : vector<2x8x8xi1>, vector<2x8x8xf32>
    %cst_73 = arith.constant dense<0xFF800000> : vector<2x8xf32>
    %131 = vector.multi_reduction <maximumf>, %130, %cst_73 [2] : vector<2x8x8xf32> to vector<2x8xf32>
    %132 = vector.shape_cast %131 : vector<2x8xf32> to vector<2x8x1xf32>
    %133 = vector.broadcast %132 : vector<2x8x1xf32> to vector<2x8x8xf32>
    %134 = arith.subf %130, %133 : vector<2x8x8xf32>
    %135 = math.exp %134 : vector<2x8x8xf32>
    %cst_74 = arith.constant dense<0.000000e+00> : vector<2x8xf32>
    %136 = vector.multi_reduction <add>, %135, %cst_74 [2] : vector<2x8x8xf32> to vector<2x8xf32>
    %137 = vector.shape_cast %136 : vector<2x8xf32> to vector<2x8x1xf32>
    %138 = vector.broadcast %137 : vector<2x8x1xf32> to vector<2x8x8xf32>
    %139 = arith.divf %135, %138 : vector<2x8x8xf32>
    %140 = arith.truncf %139 : vector<2x8x8xf32> to vector<2x8x8xbf16>
    %141 = vector.extract_strided_slice %75 {offsets = [0, 0, 64], sizes = [2, 8, 32], strides = [1, 1, 1]} : vector<2x8x128xbf16> to vector<2x8x32xbf16>
    "tpu.trace_start"() <{level = 10 : i32, message = "bqk,bkd->bqd"}> : () -> ()
    %cst_75 = arith.constant dense<0.000000e+00> : vector<2x8x32xf32>
    %142 = tpu.matmul %140, %141, %cst_75 {dimension_numbers = #tpu.dot_dimension_numbers<[2], [1], [1], [2], [0, 0, 0, 1, 1, 2], [0], [0]>} : vector<2x8x8xbf16>, vector<2x8x32xbf16>, vector<2x8x32xf32> -> vector<2x8x32xf32>
    "tpu.trace_stop"() : () -> ()
    %143 = vector.extract_strided_slice %73 {offsets = [0, 0, 96], sizes = [2, 8, 32], strides = [1, 1, 1]} : vector<2x8x128xbf16> to vector<2x8x32xbf16>
    %144 = vector.extract_strided_slice %74 {offsets = [0, 0, 96], sizes = [2, 8, 32], strides = [1, 1, 1]} : vector<2x8x128xbf16> to vector<2x8x32xbf16>
    "tpu.trace_start"() <{level = 10 : i32, message = "bqd,bkd->bqk"}> : () -> ()
    %cst_76 = arith.constant dense<0.000000e+00> : vector<2x8x8xf32>
    %145 = tpu.matmul %143, %144, %cst_76 {dimension_numbers = #tpu.dot_dimension_numbers<[2], [2], [1], [1], [0, 0, 0, 1, 1, 1], [0], [0]>} : vector<2x8x32xbf16>, vector<2x8x32xbf16>, vector<2x8x8xf32> -> vector<2x8x8xf32>
    "tpu.trace_stop"() : () -> ()
    %cst_77 = arith.constant 0.176776692 : f32
    %146 = vector.broadcast %cst_77 : f32 to vector<2x8x8xf32>
    %147 = arith.mulf %145, %146 : vector<2x8x8xf32>
    %cst_78 = arith.constant -1.000000e+09 : f32
    %148 = vector.shape_cast %79 : vector<1x8x8xi1> to vector<1x8x8xi1>
    %149 = vector.broadcast %148 : vector<1x8x8xi1> to vector<2x8x8xi1>
    %150 = vector.broadcast %cst_78 : f32 to vector<2x8x8xf32>
    %151 = arith.select %149, %147, %150 : vector<2x8x8xi1>, vector<2x8x8xf32>
    %cst_79 = arith.constant dense<0xFF800000> : vector<2x8xf32>
    %152 = vector.multi_reduction <maximumf>, %151, %cst_79 [2] : vector<2x8x8xf32> to vector<2x8xf32>
    %153 = vector.shape_cast %152 : vector<2x8xf32> to vector<2x8x1xf32>
    %154 = vector.broadcast %153 : vector<2x8x1xf32> to vector<2x8x8xf32>
    %155 = arith.subf %151, %154 : vector<2x8x8xf32>
    %156 = math.exp %155 : vector<2x8x8xf32>
    %cst_80 = arith.constant dense<0.000000e+00> : vector<2x8xf32>
    %157 = vector.multi_reduction <add>, %156, %cst_80 [2] : vector<2x8x8xf32> to vector<2x8xf32>
    %158 = vector.shape_cast %157 : vector<2x8xf32> to vector<2x8x1xf32>
    %159 = vector.broadcast %158 : vector<2x8x1xf32> to vector<2x8x8xf32>
    %160 = arith.divf %156, %159 : vector<2x8x8xf32>
    %161 = arith.truncf %160 : vector<2x8x8xf32> to vector<2x8x8xbf16>
    %162 = vector.extract_strided_slice %75 {offsets = [0, 0, 96], sizes = [2, 8, 32], strides = [1, 1, 1]} : vector<2x8x128xbf16> to vector<2x8x32xbf16>
    "tpu.trace_start"() <{level = 10 : i32, message = "bqk,bkd->bqd"}> : () -> ()
    %cst_81 = arith.constant dense<0.000000e+00> : vector<2x8x32xf32>
    %163 = tpu.matmul %161, %162, %cst_81 {dimension_numbers = #tpu.dot_dimension_numbers<[2], [1], [1], [2], [0, 0, 0, 1, 1, 2], [0], [0]>} : vector<2x8x8xbf16>, vector<2x8x32xbf16>, vector<2x8x32xf32> -> vector<2x8x32xf32>
    "tpu.trace_stop"() : () -> ()
    %164 = tpu.concatenate %100, %121, %142, %163 in 2 : vector<2x8x32xf32>, vector<2x8x32xf32>, vector<2x8x32xf32>, vector<2x8x32xf32> -> vector<2x8x128xf32>
    %165 = arith.truncf %164 : vector<2x8x128xf32> to vector<2x8x128xbf16>
    %cst_82 = arith.constant dense<0.000000e+00> : vector<2x8x128xf32>
    %166 = tpu.matmul %165, %20, %cst_82 {dimension_numbers = #tpu.dot_dimension_numbers<[2], [0], [0, 1], [1], [0, 0, 0, 1, 1, 1], [], []>} : vector<2x8x128xbf16>, vector<128x128xbf16>, vector<2x8x128xf32> -> vector<2x8x128xf32>
    %167 = vector.shape_cast %22 : vector<1x128xf32> to vector<1x1x128xf32>
    %168 = vector.broadcast %167 : vector<1x1x128xf32> to vector<2x8x128xf32>
    %169 = arith.addf %166, %168 : vector<2x8x128xf32>
    %170 = arith.addf %35, %169 : vector<2x8x128xf32>
    %cst_83 = arith.constant dense<0.000000e+00> : vector<2x8xf32>
    %171 = vector.multi_reduction <add>, %170, %cst_83 [2] : vector<2x8x128xf32> to vector<2x8xf32>
    %172 = vector.shape_cast %171 : vector<2x8xf32> to vector<2x8x1xf32>
    %cst_84 = arith.constant 1.280000e+02 : f32
    %173 = vector.broadcast %cst_84 : f32 to vector<2x8x1xf32>
    %174 = arith.divf %172, %173 : vector<2x8x1xf32>
    %175 = vector.broadcast %174 : vector<2x8x1xf32> to vector<2x8x128xf32>
    %176 = arith.subf %170, %175 : vector<2x8x128xf32>
    %177 = arith.mulf %176, %176 : vector<2x8x128xf32>
    %cst_85 = arith.constant dense<0.000000e+00> : vector<2x8xf32>
    %178 = vector.multi_reduction <add>, %177, %cst_85 [2] : vector<2x8x128xf32> to vector<2x8xf32>
    %179 = vector.shape_cast %178 : vector<2x8xf32> to vector<2x8x1xf32>
    %cst_86 = arith.constant 1.280000e+02 : f32
    %180 = vector.broadcast %cst_86 : f32 to vector<2x8x1xf32>
    %181 = arith.divf %179, %180 : vector<2x8x1xf32>
    %182 = vector.broadcast %174 : vector<2x8x1xf32> to vector<2x8x128xf32>
    %183 = arith.subf %170, %182 : vector<2x8x128xf32>
    %cst_87 = arith.constant 9.99999974E-6 : f32
    %184 = vector.broadcast %cst_87 : f32 to vector<2x8x1xf32>
    %185 = arith.addf %181, %184 : vector<2x8x1xf32>
    %186 = math.rsqrt %185 : vector<2x8x1xf32>
    %187 = vector.broadcast %186 : vector<2x8x1xf32> to vector<2x8x128xf32>
    %188 = arith.mulf %183, %187 : vector<2x8x128xf32>
    %189 = vector.shape_cast %24 : vector<1x128xf32> to vector<1x1x128xf32>
    %190 = vector.broadcast %189 : vector<1x1x128xf32> to vector<2x8x128xf32>
    %191 = arith.mulf %188, %190 : vector<2x8x128xf32>
    %192 = vector.shape_cast %26 : vector<1x128xf32> to vector<1x1x128xf32>
    %193 = vector.broadcast %192 : vector<1x1x128xf32> to vector<2x8x128xf32>
    %194 = arith.addf %191, %193 : vector<2x8x128xf32>
    %195 = arith.truncf %194 : vector<2x8x128xf32> to vector<2x8x128xbf16>
    %cst_88 = arith.constant dense<0.000000e+00> : vector<2x8x512xf32>
    %196 = tpu.matmul %195, %28, %cst_88 {dimension_numbers = #tpu.dot_dimension_numbers<[2], [0], [0, 1], [1], [0, 0, 0, 1, 1, 1], [], []>} : vector<2x8x128xbf16>, vector<128x512xbf16>, vector<2x8x512xf32> -> vector<2x8x512xf32>
    %197 = vector.shape_cast %30 : vector<1x512xf32> to vector<1x1x512xf32>
    %198 = vector.broadcast %197 : vector<1x1x512xf32> to vector<2x8x512xf32>
    %199 = arith.addf %196, %198 : vector<2x8x512xf32>
    %cst_89 = arith.constant 1.702000e+00 : f32
    %200 = vector.broadcast %cst_89 : f32 to vector<2x8x512xf32>
    %201 = arith.mulf %200, %199 : vector<2x8x512xf32>
    %202 = arith.negf %201 : vector<2x8x512xf32>
    %203 = math.exp %202 : vector<2x8x512xf32>
    %cst_90 = arith.constant 1.000000e+00 : f32
    %204 = vector.broadcast %cst_90 : f32 to vector<2x8x512xf32>
    %205 = arith.addf %204, %203 : vector<2x8x512xf32>
    %206 = arith.divf %204, %205 : vector<2x8x512xf32>
    %207 = arith.mulf %199, %206 : vector<2x8x512xf32>
    %208 = arith.truncf %207 : vector<2x8x512xf32> to vector<2x8x512xbf16>
    %cst_91 = arith.constant dense<0.000000e+00> : vector<2x8x128xf32>
    %209 = tpu.matmul %208, %32, %cst_91 {dimension_numbers = #tpu.dot_dimension_numbers<[2], [0], [0, 1], [1], [0, 0, 0, 1, 1, 1], [], []>} : vector<2x8x512xbf16>, vector<512x128xbf16>, vector<2x8x128xf32> -> vector<2x8x128xf32>
    %210 = arith.addf %170, %209 : vector<2x8x128xf32>
    %211 = vector.shape_cast %34 : vector<1x128xf32> to vector<1x1x128xf32>
    %212 = vector.broadcast %211 : vector<1x1x128xf32> to vector<2x8x128xf32>
    %213 = arith.addf %210, %212 : vector<2x8x128xf32>
    %c0_92 = arith.constant 0 : index
    %c0_93 = arith.constant 0 : index
    %c0_94 = arith.constant 0 : index
    %214 = vector.load %arg22[%c0_92, %c0_93, %c0_94] : memref<2x8x128xf32, #tpu.memory_space<vmem>>, vector<2x8x128xf32>
    tpu.vector_store %arg22[%c0_92, %c0_93, %c0_94], %213 {strides = array<i32>} : memref<2x8x128xf32, #tpu.memory_space<vmem>>, vector<2x8x128xf32>,
    %c1_i32 = arith.constant 1 : i32
    %215 = arith.cmpi eq, %arg0, %c1_i32 : i32
    %216 = arith.extui %215 : i1 to i32
    %c0_i32_95 = arith.constant 0 : i32
    %217 = arith.cmpi ne, %216, %c0_i32_95 : i32
    scf.if %217 {
      %c0_96 = arith.constant 0 : index
      %c0_97 = arith.constant 0 : index
      %218 = vector.load %arg3[%c0_96, %c0_97] : memref<1x128xf32, #tpu.memory_space<vmem>>, vector<1x128xf32>
      %c0_98 = arith.constant 0 : index
      %c0_99 = arith.constant 0 : index
      %219 = vector.load %arg4[%c0_98, %c0_99] : memref<1x128xf32, #tpu.memory_space<vmem>>, vector<1x128xf32>
      %cst_100 = arith.constant dense<0.000000e+00> : vector<2x8xf32>
      %220 = vector.multi_reduction <add>, %213, %cst_100 [2] : vector<2x8x128xf32> to vector<2x8xf32>
      %221 = vector.shape_cast %220 : vector<2x8xf32> to vector<2x8x1xf32>
      %cst_101 = arith.constant 1.280000e+02 : f32
      %222 = vector.broadcast %cst_101 : f32 to vector<2x8x1xf32>
      %223 = arith.divf %221, %222 : vector<2x8x1xf32>
      %224 = vector.broadcast %223 : vector<2x8x1xf32> to vector<2x8x128xf32>
      %225 = arith.subf %213, %224 : vector<2x8x128xf32>
      %226 = arith.mulf %225, %225 : vector<2x8x128xf32>
      %cst_102 = arith.constant dense<0.000000e+00> : vector<2x8xf32>
      %227 = vector.multi_reduction <add>, %226, %cst_102 [2] : vector<2x8x128xf32> to vector<2x8xf32>
      %228 = vector.shape_cast %227 : vector<2x8xf32> to vector<2x8x1xf32>
      %cst_103 = arith.constant 1.280000e+02 : f32
      %229 = vector.broadcast %cst_103 : f32 to vector<2x8x1xf32>
      %230 = arith.divf %228, %229 : vector<2x8x1xf32>
      %231 = vector.broadcast %223 : vector<2x8x1xf32> to vector<2x8x128xf32>
      %232 = arith.subf %213, %231 : vector<2x8x128xf32>
      %cst_104 = arith.constant 9.99999974E-6 : f32
      %233 = vector.broadcast %cst_104 : f32 to vector<2x8x1xf32>
      %234 = arith.addf %230, %233 : vector<2x8x1xf32>
      %235 = math.rsqrt %234 : vector<2x8x1xf32>
      %236 = vector.broadcast %235 : vector<2x8x1xf32> to vector<2x8x128xf32>
      %237 = arith.mulf %232, %236 : vector<2x8x128xf32>
      %238 = vector.shape_cast %218 : vector<1x128xf32> to vector<1x1x128xf32>
      %239 = vector.broadcast %238 : vector<1x1x128xf32> to vector<2x8x128xf32>
      %240 = arith.mulf %237, %239 : vector<2x8x128xf32>
      %241 = vector.shape_cast %219 : vector<1x128xf32> to vector<1x1x128xf32>
      %242 = vector.broadcast %241 : vector<1x1x128xf32> to vector<2x8x128xf32>
      %243 = arith.addf %240, %242 : vector<2x8x128xf32>
      %c0_105 = arith.constant 0 : index
      %c0_106 = arith.constant 0 : index
      %244 = vector.load %arg2[%c0_105, %c0_106] : memref<2x8xf32, #tpu.memory_space<vmem>>, vector<2x8xf32>
      %245 = vector.shape_cast %244 : vector<2x8xf32> to vector<2x8x1xf32>
      %246 = vector.broadcast %245 : vector<2x8x1xf32> to vector<2x8x128xf32>
      %247 = arith.mulf %246, %243 : vector<2x8x128xf32>
      %cst_107 = arith.constant dense<0.000000e+00> : vector<2x128xf32>
      %248 = vector.multi_reduction <add>, %247, %cst_107 [1] : vector<2x8x128xf32> to vector<2x128xf32>
      %c0_108 = arith.constant 0 : index
      %c0_109 = arith.constant 0 : index
      %249 = vector.load %arg21[%c0_108, %c0_109] : memref<2x128xf32, #tpu.memory_space<vmem>>, vector<2x128xf32>
      tpu.vector_store %arg21[%c0_108, %c0_109], %248 {strides = array<i32>} : memref<2x128xf32, #tpu.memory_space<vmem>>, vector<2x128xf32>,
    } else {
    }
    return
  }
  func.func @transform_0(%arg0: i32) -> (i32, i32, i32) {
    %c0_i32 = arith.constant 0 : i32
    %c0_i32_0 = arith.constant 0 : i32
    %c0_i32_1 = arith.constant 0 : i32
    %c0_i32_2 = arith.constant 0 : i32
    return %c0_i32, %c0_i32_0, %c0_i32_1 : i32, i32, i32
  }
  func.func @transform_1(%arg0: i32) -> (i32, i32) {
    %c0_i32 = arith.constant 0 : i32
    %c0_i32_0 = arith.constant 0 : i32
    %c0_i32_1 = arith.constant 0 : i32
    return %c0_i32, %c0_i32_0 : i32, i32
  }
  func.func @transform_2(%arg0: i32) -> (i32, i32) {
    %c0_i32 = arith.constant 0 : i32
    %c0_i32_0 = arith.constant 0 : i32
    %c0_i32_1 = arith.constant 0 : i32
    return %c0_i32, %c0_i32_0 : i32, i32
  }
  func.func @transform_3(%arg0: i32) -> (i32, i32) {
    %c0_i32 = arith.constant 0 : i32
    %c0_i32_0 = arith.constant 0 : i32
    %c0_i32_1 = arith.constant 0 : i32
    return %c0_i32, %c0_i32_0 : i32, i32
  }
  func.func @transform_4(%arg0: i32) -> (i32, i32, i32) {
    %c0_i32 = arith.constant 0 : i32
    %c0_i32_0 = arith.constant 0 : i32
    %c0_i32_1 = arith.constant 0 : i32
    return %arg0, %c0_i32, %c0_i32_0 : i32, i32, i32
  }
  func.func @transform_5(%arg0: i32) -> (i32, i32, i32) {
    %c0_i32 = arith.constant 0 : i32
    %c0_i32_0 = arith.constant 0 : i32
    %c0_i32_1 = arith.constant 0 : i32
    return %arg0, %c0_i32, %c0_i32_0 : i32, i32, i32
  }
  func.func @transform_6(%arg0: i32) -> (i32, i32, i32) {
    %c0_i32 = arith.constant 0 : i32
    %c0_i32_0 = arith.constant 0 : i32
    %c0_i32_1 = arith.constant 0 : i32
    return %arg0, %c0_i32, %c0_i32_0 : i32, i32, i32
  }
  func.func @transform_7(%arg0: i32) -> (i32, i32, i32) {
    %c0_i32 = arith.constant 0 : i32
    %c0_i32_0 = arith.constant 0 : i32
    %c0_i32_1 = arith.constant 0 : i32
    return %arg0, %c0_i32, %c0_i32_0 : i32, i32, i32
  }
  func.func @transform_8(%arg0: i32) -> (i32, i32, i32) {
    %c0_i32 = arith.constant 0 : i32
    %c0_i32_0 = arith.constant 0 : i32
    %c0_i32_1 = arith.constant 0 : i32
    return %arg0, %c0_i32, %c0_i32_0 : i32, i32, i32
  }
  func.func @transform_9(%arg0: i32) -> (i32, i32, i32) {
    %c0_i32 = arith.constant 0 : i32
    %c0_i32_0 = arith.constant 0 : i32
    %c0_i32_1 = arith.constant 0 : i32
    return %arg0, %c0_i32, %c0_i32_0 : i32, i32, i32
  }
  func.func @transform_10(%arg0: i32) -> (i32, i32, i32) {
    %c0_i32 = arith.constant 0 : i32
    %c0_i32_0 = arith.constant 0 : i32
    %c0_i32_1 = arith.constant 0 : i32
    return %arg0, %c0_i32, %c0_i32_0 : i32, i32, i32
  }
  func.func @transform_11(%arg0: i32) -> (i32, i32, i32) {
    %c0_i32 = arith.constant 0 : i32
    %c0_i32_0 = arith.constant 0 : i32
    %c0_i32_1 = arith.constant 0 : i32
    return %arg0, %c0_i32, %c0_i32_0 : i32, i32, i32
  }
  func.func @transform_12(%arg0: i32) -> (i32, i32, i32) {
    %c0_i32 = arith.constant 0 : i32
    %c0_i32_0 = arith.constant 0 : i32
    %c0_i32_1 = arith.constant 0 : i32
    return %arg0, %c0_i32, %c0_i32_0 : i32, i32, i32
  }
  func.func @transform_13(%arg0: i32) -> (i32, i32, i32) {
    %c0_i32 = arith.constant 0 : i32
    %c0_i32_0 = arith.constant 0 : i32
    %c0_i32_1 = arith.constant 0 : i32
    return %arg0, %c0_i32, %c0_i32_0 : i32, i32, i32
  }
  func.func @transform_14(%arg0: i32) -> (i32, i32, i32) {
    %c0_i32 = arith.constant 0 : i32
    %c0_i32_0 = arith.constant 0 : i32
    %c0_i32_1 = arith.constant 0 : i32
    return %arg0, %c0_i32, %c0_i32_0 : i32, i32, i32
  }
  func.func @transform_15(%arg0: i32) -> (i32, i32, i32) {
    %c0_i32 = arith.constant 0 : i32
    %c0_i32_0 = arith.constant 0 : i32
    %c0_i32_1 = arith.constant 0 : i32
    return %arg0, %c0_i32, %c0_i32_0 : i32, i32, i32
  }
  func.func @transform_16(%arg0: i32) -> (i32, i32, i32) {
    %c0_i32 = arith.constant 0 : i32
    %c0_i32_0 = arith.constant 0 : i32
    %c0_i32_1 = arith.constant 0 : i32
    return %arg0, %c0_i32, %c0_i32_0 : i32, i32, i32
  }
  func.func @transform_17(%arg0: i32) -> (i32, i32, i32) {
    %c0_i32 = arith.constant 0 : i32
    %c0_i32_0 = arith.constant 0 : i32
    %c0_i32_1 = arith.constant 0 : i32
    return %arg0, %c0_i32, %c0_i32_0 : i32, i32, i32
  }
  func.func @transform_18(%arg0: i32) -> (i32, i32, i32) {
    %c0_i32 = arith.constant 0 : i32
    %c0_i32_0 = arith.constant 0 : i32
    %c0_i32_1 = arith.constant 0 : i32
    return %arg0, %c0_i32, %c0_i32_0 : i32, i32, i32
  }
  func.func @transform_19(%arg0: i32) -> (i32, i32, i32) {
    %c0_i32 = arith.constant 0 : i32
    %c0_i32_0 = arith.constant 0 : i32
    %c0_i32_1 = arith.constant 0 : i32
    return %arg0, %c0_i32, %c0_i32_0 : i32, i32, i32
  }
  func.func @transform_20(%arg0: i32) -> (i32, i32) {
    %c0_i32 = arith.constant 0 : i32
    %c0_i32_0 = arith.constant 0 : i32
    %c0_i32_1 = arith.constant 0 : i32
    return %c0_i32, %c0_i32_0 : i32, i32
  }
}

</mosaic_0001>

<bundles_post_ra>
// kernel: tpu_custom_call.1
= control target key start
LH: loop header
LB: loop body
LE: loop exit
PB: predicated region body
PF: predicated region fallthrough
CT: control target
= control target key end

     0   :  { %s5810_s0 = inlined_call_operand.hbm [shape: f32[2,8,128], index: 0, kind: input, shape index: {}]   ;;  %s5811_s1 = inlined_call_operand.vmem [shape: f32[2,8], index: 1, kind: input, shape index: {}]   ;;  %s5812_s2 = inlined_call_operand.hbm [shape: f32[1,128], index: 2, kind: input, shape index: {}]   ;;  %s5813_s3 = inlined_call_operand.hbm [shape: f32[1,128], index: 3, kind: input, shape index: {}]   ;;  %s5814_s4 = inlined_call_operand.vmem [shape: f32[2,1,128], index: 4, kind: input, shape index: {}]   ;;  %s5815_s5 = inlined_call_operand.vmem [shape: f32[2,1,128], index: 5, kind: input, shape index: {}]   ;;  %s5816_s6 = inlined_call_operand.hbm [shape: bf16[2,128,128], index: 6, kind: input, shape index: {}]   ;;  %s5817_s7 = inlined_call_operand.vmem [shape: f32[2,1,128], index: 7, kind: input, shape index: {}]   ;;  %s5818_s8 = inlined_call_operand.hbm [shape: bf16[2,128,128], index: 8, kind: input, shape index: {}]   ;;  %s5819_s9 = inlined_call_operand.vmem [shape: f32[2,1,128], index: 9, kind: input, shape index: {}]   ;;  %s5820_s10 = inlined_call_operand.hbm [shape: bf16[2,128,128], index: 10, kind: input, shape index: {}]   ;;  %s5821_s11 = inlined_call_operand.vmem [shape: f32[2,1,128], index: 11, kind: input, shape index: {}]   ;;  %s5822_s12 = inlined_call_operand.hbm [shape: bf16[2,128,128], index: 12, kind: input, shape index: {}]   ;;  %s5823_s13 = inlined_call_operand.vmem [shape: f32[2,1,128], index: 13, kind: input, shape index: {}]   ;;  %s5824_s14 = inlined_call_operand.vmem [shape: f32[2,1,128], index: 14, kind: input, shape index: {}]   ;;  %s5825_s15 = inlined_call_operand.vmem [shape: f32[2,1,128], index: 15, kind: input, shape index: {}]   ;;  %s5826_s16 = inlined_call_operand.hbm [shape: bf16[2,128,512], index: 16, kind: input, shape index: {}]   ;;  %s5827_s17 = inlined_call_operand.vmem [shape: f32[2,1,512], index: 17, kind: input, shape index: {}]   ;;  %s5828_s18 = inlined_call_operand.hbm [shape: bf16[2,512,128], index: 18, kind: input, shape index: {}]   ;;  %s5829_s19 = inlined_call_operand.vmem [shape: f32[2,1,128], index: 19, kind: input, shape index: {}]   ;;  %s5830_s20 = inlined_call_operand.hbm [shape: f32[2,128], index: 20, kind: output, shape index: {}]  }
   0x1   :  { %5865 = sst [smem:[#allocation32_spill]] %s5810_s0 }
   0x2   :  { %5866 = sst [smem:[#allocation33_spill]] %s5811_s1 }
   0x3   :  { %5867 = sst [smem:[#allocation34_spill]] %s5812_s2 }
   0x4   :  { %5868 = sst [smem:[#allocation35_spill]] %s5813_s3 }
   0x5   :  { %5869 = sst [smem:[#allocation36_spill]] %s5814_s4 }
   0x6   :  { %5870 = sst [smem:[#allocation37_spill]] %s5815_s5 }
   0x7   :  { %5871 = sst [smem:[#allocation38_spill]] %s5816_s6 }
   0x8   :  { %5872 = sst [smem:[#allocation39_spill]] %s5817_s7 }
   0x9   :  { %5873 = sst [smem:[#allocation40_spill]] %s5818_s8 }
   0xa   :  { %5874 = sst [smem:[#allocation41_spill]] %s5819_s9 }
   0xb   :  { %5875 = sst [smem:[#allocation42_spill]] %s5820_s10 }
   0xc   :  { %5876 = sst [smem:[#allocation43_spill]] %s5821_s11 }
   0xd   :  { %5877 = sst [smem:[#allocation44_spill]] %s5822_s12 }
   0xe   :  { %5878 = sst [smem:[#allocation45_spill]] %s5823_s13 }
   0xf   :  { %5879 = sst [smem:[#allocation46_spill]] %s5824_s14 }
  0x10   :  { %5880 = sst [smem:[#allocation47_spill]] %s5825_s15 }
  0x11   :  { %5881 = sst [smem:[#allocation48_spill]] %s5826_s16 }
  0x12   :  { %5882 = sst [smem:[#allocation49_spill]] %s5827_s17 }
  0x13   :  { %5883 = sst [smem:[#allocation50_spill]] %s5829_s19 }
  0x14   :  { %5884 = sst [smem:[#allocation51_spill]] %s5830_s20 }
  0x15   :  { %25 = vsyncpa [#allocation4], 0 }
  0x16   :  { %26 = vsyncpa [#allocation7], 0 }
  0x17   :  { %27 = vsyncpa [#allocation10], 0 }
  0x18   :  { %29 = vsyncpa [#allocation10 + $0x1], 0 }
  0x19   :  { %30 = vsyncpa [#allocation13], 0 }
  0x1a   :  { %32 = vsyncpa [#allocation13 + $0x1], 0 }
  0x1b   :  { %33 = vsyncpa [#allocation16], 0 }
  0x1c   :  { %35 = vsyncpa [#allocation16 + $0x1], 0 }
  0x1d   :  { %36 = vsyncpa [#allocation5], 0  ;;  %s4899_s1 = smov 0   ;;  %s4901_s22 = smov 0  }
  0x1e   :  { %s4903_s23 = smov 0   ;;  %s4905_s24 = smov 0  }
  0x1f LB: > { %5885 = sst [smem:[#allocation25_spill]] %s4762_s22  ;;  %s4918_s2 = sadd.s32 4294967295, %s4770_s24   ;;  %s4770_s24 = sphi %s4905_s24, %s5958_s24   ;;  %s4766_s23 = sphi %s4903_s23, %s5961_s23   ;;  %s4762_s22 = sphi %s4901_s22, %s5960_s22   ;;  %s4758_s1 = sphi %s4899_s1, %s5959_s1  }
  0x20   : > { %5886 = sst [smem:[#allocation26_spill]] %s4766_s23  ;;  %s4921_s25 = sadd.s32 1, %s4770_s24  }
  0x21   : > { %5887 = sst [smem:[#allocation27_spill]] %s4918_s2  ;;  %s182_s3 = ssub.s32 %s4770_s24, %s4921_s25 }
  0x22   : > { %5888 = sst [smem:[#allocation28_spill]] %s4921_s25  ;;  %s185_s26 = sadd.s32 1, %s4766_s23 }
  0x23   : > { %p183_p0 = scmp.eq.s32.totalorder %s182_s3, 0  ;;  %p192_p1 = scmp.ne.s32.totalorder %s4766_s23, %s4762_s22 }
  0x24   : > { %p193_p2 = scmp.eq.s32.totalorder %s4770_s24, 0  ;;  %p198_p3 = scmp.ne.s32.totalorder %s4762_s22, %s4758_s1 }
  0x25   : > { %s4931_s27 = scalar_select %p183_p0, %s4766_s23, %s185_s26  }
  0x26   : > { %p4933_p4 = por %p193_p2, %p192_p1  ;;  %p5838_p5 = scmp.eq.s32.totalorder %s4918_s2, 0 }
  0x27   : > { %5889 = sst [smem:[#allocation29_spill]] %s4931_s27  ;;  %p3628_p6 = scmp.ge.s32.totalorder %s4770_s24, 1 }
  0x28   : > { %p568_p7 = scmp.lt.s32.totalorder %s4770_s24, 3  ;;  %p4942_p8 = por %p5838_p5, %p198_p3 }
  0x29   : > { %s4772_s30 = smov [#allocation6]   ;;  %p4167_p12 = scmp.lt.s32.totalorder %s4770_s24, 2 }
  0x2a   : > { %s5891_s4 = scalar_select %p4942_p8, 1, 0 }
  0x2b   : > { %p4947_p10 = pnand %p3628_p6, %p568_p7  ;;  %s597_s0 = sshll.u32 %s4772_s30, 4  ;;  %s598_s0 = int_to_ptr.vmem [resolvable:$true] %s597_s0 }
  0x2c   : > { %5892 = sst [smem:[#allocation30_spill]] %s5891_s4  ;;  %s4955_s21 = sand.u32 1, %s4770_s24  }
  0x2d   : > { %s5893_s29 = scalar_select %p4947_p10, 1, 0 }
  0x2e   : > { %p4135_p11 = pneg %p4947_p10  ;;  %p4965_p0 = pnand %p4167_p12, %p4933_p4 }
  0x2f   : > { %5894 = sst [smem:[#allocation31_spill]] %s5893_s29  ;;  %s5837_s26 = sand.u32 1, %s4766_s23  }
  0x30   : > { %p4959_p13 = pnand %p4135_p11, %p5838_p5  ;;  %s4972_s30 = sshll.u32 %s5837_s26, 6 }
  0x31   : > { %s5896_s3 = scalar_select %p4965_p0, 1, 0 }
  0x32   : > { %s5895_s1 = scalar_select %p4959_p13, 1, 0 }
  0x33   : > { %s5897_s20 = sld [smem:[#allocation34_spill]]  ;;  %p4982_p2 = pneg %p4959_p13 }
  0x35   : > { %s5898_s28 = scalar_select %p4982_p2, 1, 0 }
  0x39   : > { %s4426_s17 = scalar_lea.hbm %s5897_s20, 16 }
  0x3a   : > { %p4427_p1 = scmp.ne.s32.totalorder %s5897_s20, %s4426_s17  ;;  %p4433_p6 = scmp.lt.u32.totalorder %s4426_s17, %s5897_s20 }
  0x3c   : > { %p4429_p3 = pnand %p4982_p2, %p4427_p1 }
  0x3e   : > { %p4430_p4 = pneg %p4429_p3 }
  0x40   : > { %p4435_p7 = pnand %p4433_p6, %p4430_p4 }
  0x42   : > { %4438 = shalt.err (!%p4435_p7)
}
  0x43   : > { %s4439_s25 = scalar_lea.vmem %s598_s0, 16  ;;  %s4446_s15 = scalar_lea.vmem %s598_s0, 32 }
  0x44   : > { %p4440_p11 = scmp.ne.s32.totalorder %s598_s0, %s4439_s25  ;;  %p4447_p5 = scmp.lt.s32.totalorder %s598_s0, %s598_s0 }
  0x45   : > { %p4448_p8 = scmp.lt.s32.totalorder %s4446_s15, %s4439_s25 }
  0x46   : > { %p4442_p12 = pnand %p4440_p11, %p4982_p2 }
  0x47   : > { %p4449_p10 = por %p4448_p8, %p4447_p5 }
  0x48   : > { %p4443_p9 = pneg %p4442_p12 }
  0x4a   : > { %p4450_p0 = pnand %p4449_p10, %p4443_p9 }
  0x4c   : > { %4453 = shalt.err (!%p4450_p0)
}
  0x4d   : > { %4141 = dma.hbm_to_vmem [thread:$0]  (!%p4959_p13), %s5897_s20, 16, %s598_s0, [#allocation7]  }
  0x4e   : > { %s4999_s14 = sshll.u32 %s4770_s24, 10  ;;  %s635_s17 = scalar_lea.vmem [#allocation9], %s4972_s30 }
  0x4f   : > { %s642_s26 = sshll.u32 %s635_s17, 4  ;;  %s5899_s6 = sld [smem:[#allocation38_spill]]  ;;  %s5008_s26 = int_to_ptr.vmem [resolvable:$true] %s642_s26 }
  0x50   : > { %p5900_p8 = scmp.ne.s32.totalorder %s5896_s3, 0 }
  0x52   : > { %p5015_p9 = pneg %p5900_p8 }
  0x54   : > { %s5901_s0 = scalar_select %p5015_p9, 1, 0 }
  0x55   : > { %s5006_s15 = scalar_lea.hbm %s5899_s6, %s4999_s14  ;;  %s4459_s25 = scalar_lea.hbm %s5899_s6, 2048 }
  0x56   : > { %s4454_s27 = scalar_lea.hbm %s5006_s15, 1024  ;;  %p4460_p1 = scmp.lt.u32.totalorder %s5006_s15, %s5899_s6 }
  0x57   : > { %p4455_p5 = scmp.ne.s32.totalorder %s5006_s15, %s4454_s27  ;;  %p4461_p3 = scmp.lt.u32.totalorder %s4459_s25, %s4454_s27 }
  0x58   : > { %p4463_p6 = scmp.lt.u32.totalorder %s4454_s27, %s5006_s15 }
  0x59   : > { %p4457_p10 = pnand %p5015_p9, %p4455_p5  ;;  %p4462_p4 = por %p4461_p3, %p4460_p1 }
  0x5b   : > { %p4458_p0 = pneg %p4457_p10  ;;  %p4464_p7 = por %p4463_p6, %p4462_p4 }
  0x5d   : > { %p4465_p11 = pnand %p4464_p7, %p4458_p0 }
  0x5f   : > { %4468 = shalt.err (!%p4465_p11)
}
  0x60   : > { %s4469_s19 = scalar_lea.vmem %s5008_s26, 1024  ;;  %s4773_s13 = smov [#allocation9]  }
  0x61   : > { %p4470_p12 = scmp.ne.s32.totalorder %s5008_s26, %s4469_s19  ;;  %s4474_s17 = sshll.u32 %s4773_s13, 4  ;;  %s4475_s17 = int_to_ptr.vmem [resolvable:$false] %s4474_s17 }
  0x62   : > { %s4476_s11 = scalar_lea.vmem %s4475_s17, 2048  ;;  %p4477_p13 = scmp.lt.s32.totalorder %s5008_s26, %s4475_s17 }
  0x63   : > { %p4472_p5 = pnand %p4470_p12, %p5015_p9  ;;  %p4478_p2 = scmp.lt.s32.totalorder %s4476_s11, %s4469_s19 }
  0x65   : > { %p4473_p10 = pneg %p4472_p5  ;;  %p4479_p1 = por %p4478_p2, %p4477_p13 }
  0x67   : > { %p4480_p3 = pnand %p4479_p1, %p4473_p10 }
  0x69   : > { %4483 = shalt.err (!%p4480_p3)
}
  0x6a   : > { %s5848_s20 = smov 64   ;;  %s5850_s27 = smov 4  }
  0x6b   : > { %s5902_s25 = scalar_lea.sflag [#allocation10], %s4955_s21  ;;  %s5903_s10 = sld [smem:[#allocation42_spill]] }
  0x6c   : > { %4148 = dma.hbm_to_vmem [thread:$0]  (!%p5900_p8), %s5006_s15, 1024, %s5008_s26, %s5902_s25, %s5848_s20, %s5848_s20, %s5850_s27  }
  0x6d   : > { %s689_s11 = scalar_lea.vmem [#allocation12], %s4972_s30  ;;  %s5847_s9 = scalar_lea.sflag [#allocation13], %s4955_s21 }
  0x6e   : > { %s696_s6 = sshll.u32 %s689_s11, 4  ;;  %s5050_s6 = int_to_ptr.vmem [resolvable:$true] %s696_s6 }
  0x71   : > { %s5047_s17 = scalar_lea.hbm %s5903_s10, %s4999_s14  ;;  %s4489_s25 = scalar_lea.hbm %s5903_s10, 2048 }
  0x72   : > { %s4484_s7 = scalar_lea.hbm %s5047_s17, 1024  ;;  %p4490_p4 = scmp.lt.u32.totalorder %s5047_s17, %s5903_s10 }
  0x73   : > { %p4485_p13 = scmp.ne.s32.totalorder %s5047_s17, %s4484_s7  ;;  %p4491_p6 = scmp.lt.u32.totalorder %s4489_s25, %s4484_s7 }
  0x74   : > { %p4493_p11 = scmp.lt.u32.totalorder %s4484_s7, %s5047_s17 }
  0x75   : > { %p4487_p2 = pnand %p4485_p13, %p5015_p9  ;;  %p4492_p7 = por %p4491_p6, %p4490_p4 }
  0x77   : > { %p4488_p0 = pneg %p4487_p2  ;;  %p4494_p12 = por %p4493_p11, %p4492_p7 }
  0x79   : > { %p4495_p5 = pnand %p4494_p12, %p4488_p0 }
  0x7b   : > { %4498 = shalt.err (!%p4495_p5)
}
  0x7c   : > { %s4499_s11 = scalar_lea.vmem %s5050_s6, 1024  ;;  %s4776_s26 = smov [#allocation12]  }
  0x7d   : > { %p4500_p10 = scmp.ne.s32.totalorder %s5050_s6, %s4499_s11  ;;  %s4504_s15 = sshll.u32 %s4776_s26, 4  ;;  %s4505_s15 = int_to_ptr.vmem [resolvable:$false] %s4504_s15 }
  0x7e   : > { %s4506_s19 = scalar_lea.vmem %s4505_s15, 2048  ;;  %p4507_p13 = scmp.lt.s32.totalorder %s5050_s6, %s4505_s15 }
  0x7f   : > { %p4502_p1 = pnand %p4500_p10, %p5015_p9  ;;  %p4508_p2 = scmp.lt.s32.totalorder %s4506_s19, %s4499_s11 }
  0x81   : > { %p4503_p3 = pneg %p4502_p1  ;;  %p4509_p4 = por %p4508_p2, %p4507_p13 }
  0x83   : > { %p4510_p6 = pnand %p4509_p4, %p4503_p3 }
  0x85   : > { %4513 = shalt.err (!%p4510_p6)
}
  0x86   : > { %4154 = dma.hbm_to_vmem [thread:$0]  (!%p5900_p8), %s5047_s17, 1024, %s5050_s6, %s5847_s9, %s5848_s20, %s5848_s20, %s5850_s27  }
  0x87   : > { %s5904_s7 = sand.u32 1, %s4766_s23   ;;  %s3810_s13 = sshll.u32 %s4770_s24, 12 }
  0x88   : > { %s5081_s25 = sshll.u32 %s5904_s7, 8  ;;  %s5905_s16 = sld [smem:[#allocation48_spill]] }
  0x89   : > { %s755_s19 = scalar_lea.vmem [#allocation15], %s5081_s25  ;;  %s752_s6 = scalar_lea.sflag [#allocation16], %s4955_s21 }
  0x8a   : > { %s762_s10 = sshll.u32 %s755_s19, 4  ;;  %s5092_s10 = int_to_ptr.vmem [resolvable:$true] %s762_s10 }
  0x8e   : > { %s5089_s15 = scalar_lea.hbm %s5905_s16, %s3810_s13  ;;  %s4519_s11 = scalar_lea.hbm %s5905_s16, 8192 }
  0x8f   : > { %s4514_s17 = scalar_lea.hbm %s5089_s15, 4096  ;;  %p4520_p12 = scmp.lt.u32.totalorder %s5089_s15, %s5905_s16 }
  0x90   : > { %p4515_p0 = scmp.ne.s32.totalorder %s5089_s15, %s4514_s17  ;;  %p4521_p5 = scmp.lt.u32.totalorder %s4519_s11, %s4514_s17 }
  0x91   : > { %p4523_p1 = scmp.lt.u32.totalorder %s4514_s17, %s5089_s15 }
  0x92   : > { %p4517_p7 = pnand %p4515_p0, %p5015_p9  ;;  %p4522_p10 = por %p4521_p5, %p4520_p12 }
  0x94   : > { %p4518_p11 = pneg %p4517_p7  ;;  %p4524_p3 = por %p4523_p1, %p4522_p10 }
  0x96   : > { %p4525_p13 = pnand %p4524_p3, %p4518_p11 }
  0x98   : > { %4528 = shalt.err (!%p4525_p13)
}
  0x99   : > { %s4529_s19 = scalar_lea.vmem %s5092_s10, 4096  ;;  %s4777_s9 = smov [#allocation15]  }
  0x9a   : > { %p4530_p2 = scmp.ne.s32.totalorder %s5092_s10, %s4529_s19  ;;  %s4534_s7 = sshll.u32 %s4777_s9, 4  ;;  %s4535_s7 = int_to_ptr.vmem [resolvable:$false] %s4534_s7 }
  0x9b   : > { %s4536_s20 = scalar_lea.vmem %s4535_s7, 8192  ;;  %p4537_p0 = scmp.lt.s32.totalorder %s5092_s10, %s4535_s7 }
  0x9c   : > { %p4532_p4 = pnand %p4530_p2, %p5015_p9  ;;  %p4538_p7 = scmp.lt.s32.totalorder %s4536_s20, %s4529_s19 }
  0x9e   : > { %p4533_p6 = pneg %p4532_p4  ;;  %p4539_p12 = por %p4538_p7, %p4537_p0 }
  0xa0   : > { %p4540_p5 = pnand %p4539_p12, %p4533_p6 }
  0xa2   : > { %4543 = shalt.err (!%p4540_p5)
}
  0xa3   : > { %s4778_s17 = smov 256   ;;  %s4779_s11 = smov 16  }
  0xa4   : > { %4160 = dma.hbm_to_vmem [thread:$0]  (!%p5900_p8), %s5089_s15, 4096, %s5092_s10, %s752_s6, %s4778_s17, %s4778_s17, %s4779_s11  }
  0xa5   : > { %s5123_s19 = scalar_lea.hbm %s5828_s18, %s3810_s13  ;;  %s783_s7 = scalar_lea.vmem [#allocation17], %s5081_s25 }
  0xa6   : > { %s5126_s20 = sshll.u32 %s783_s7, 4  ;;  %s4780_s27 = smov [#allocation3]   ;;  %s5206_s20 = int_to_ptr.vmem [resolvable:$true] %s5126_s20 }
  0xa7   : > { %s580_s16 = sshll.u32 %s4780_s27, 4  ;;  %s5906_s4 = sld [smem:[#allocation32_spill]]  ;;  %s581_s16 = int_to_ptr.vmem [resolvable:$true] %s580_s16 }
  0xa8   : > { %p5907_p10 = scmp.ne.s32.totalorder %s5898_s28, 0 }
  0xad   : > { %s4544_s22 = scalar_lea.hbm %s5906_s4, 256 }
  0xae   : > { %p4545_p11 = scmp.ne.s32.totalorder %s5906_s4, %s4544_s22  ;;  %p4551_p13 = scmp.lt.u32.totalorder %s4544_s22, %s5906_s4 }
  0xb0   : > { %p4547_p1 = pnand %p4545_p11, %p5907_p10 }
  0xb2   : > { %p4548_p3 = pneg %p4547_p1 }
  0xb4   : > { %p4553_p2 = pnand %p4551_p13, %p4548_p3 }
  0xb6   : > { %4556 = shalt.err (!%p4553_p2)
}
  0xb7   : > { %s4557_s25 = scalar_lea.vmem %s581_s16, 256  ;;  %p4565_p7 = scmp.lt.s32.totalorder %s581_s16, %s581_s16 }
  0xb8   : > { %p4558_p4 = scmp.ne.s32.totalorder %s581_s16, %s4557_s25  ;;  %p4566_p12 = scmp.lt.s32.totalorder %s4557_s25, %s4557_s25 }
  0xba   : > { %p4560_p6 = pnand %p4558_p4, %p5907_p10  ;;  %p4567_p5 = por %p4566_p12, %p4565_p7 }
  0xbc   : > { %p4561_p0 = pneg %p4560_p6 }
  0xbe   : > { %p4568_p8 = pnand %p4567_p5, %p4561_p0 }
  0xc0   : > { %4571 = shalt.err (!%p4568_p8)
}
  0xc1   : > { %s4781_s5 = smov 128   ;;  %s4782_s23 = smov 8  }
  0xc2   : > { %p5908_p11 = scmp.ne.s32.totalorder %s5895_s1, 0  ;;  %s4783_s29 = smov [#allocation8]  }
  0xc3   : > { %s608_s27 = sshll.u32 %s4783_s29, 4  ;;  %s5909_s8 = sld [smem:[#allocation40_spill]]  ;;  %s609_s27 = int_to_ptr.vmem [resolvable:$true] %s608_s27 }
  0xc4   : > { %4138 = dma.hbm_to_vmem [thread:$0]  (!%p5908_p11), %s5906_s4, 256, %s581_s16, [#allocation4], %s4781_s5, %s4781_s5, %s4782_s23  }
  0xc5   : > { %s5910_s9 = sld [smem:[#allocation35_spill]] }
  0xc9   : > { %s5150_s17 = scalar_lea.hbm %s5909_s8, %s4999_s14 }
  0xcb   : > { %s4572_s7 = scalar_lea.hbm %s5910_s9, 16 }
  0xcc   : > { %p4573_p8 = scmp.ne.s32.totalorder %s5910_s9, %s4572_s7  ;;  %p4579_p13 = scmp.lt.u32.totalorder %s4572_s7, %s5910_s9 }
  0xce   : > { %p4575_p1 = pnand %p4573_p8, %p5907_p10 }
  0xd0   : > { %p4576_p3 = pneg %p4575_p1 }
  0xd2   : > { %p4581_p2 = pnand %p4579_p13, %p4576_p3 }
  0xd4   : > { %4584 = shalt.err (!%p4581_p2)
}
  0xd5   : > { %s4585_s5 = scalar_lea.vmem %s609_s27, 16  ;;  %s4592_s23 = scalar_lea.vmem %s609_s27, 32 }
  0xd6   : > { %p4586_p4 = scmp.ne.s32.totalorder %s609_s27, %s4585_s5  ;;  %p4593_p7 = scmp.lt.s32.totalorder %s609_s27, %s609_s27 }
  0xd7   : > { %p4594_p12 = scmp.lt.s32.totalorder %s4592_s23, %s4585_s5 }
  0xd8   : > { %p4588_p6 = pnand %p4586_p4, %p5907_p10 }
  0xd9   : > { %p4595_p5 = por %p4594_p12, %p4593_p7 }
  0xda   : > { %p4589_p0 = pneg %p4588_p6 }
  0xdc   : > { %p4596_p9 = pnand %p4595_p5, %p4589_p0 }
  0xde   : > { %4599 = shalt.err (!%p4596_p9)
}
  0xdf   : > { %4144 = dma.hbm_to_vmem [thread:$0]  (!%p5908_p11), %s5910_s9, 16, %s609_s27, [#allocation7]  }
  0xe0   : > { %s662_s28 = scalar_lea.vmem [#allocation11], %s4972_s30  ;;  %s5911_s12 = sld [smem:[#allocation44_spill]] }
  0xe1   : > { %s669_s29 = sshll.u32 %s662_s28, 4  ;;  %s4600_s1 = scalar_lea.hbm %s5150_s17, 1024  ;;  %s5171_s29 = int_to_ptr.vmem [resolvable:$true] %s669_s29 }
  0xe2   : > { %p4601_p9 = scmp.ne.s32.totalorder %s5150_s17, %s4600_s1  ;;  %p5912_p10 = scmp.ne.s32.totalorder %s5901_s0, 0 }
  0xe3   : > { %s4605_s10 = scalar_lea.hbm %s5909_s8, 2048  ;;  %p4606_p11 = scmp.lt.u32.totalorder %s5150_s17, %s5909_s8 }
  0xe4   : > { %p4603_p8 = pnand %p4601_p9, %p5912_p10  ;;  %p4607_p3 = scmp.lt.u32.totalorder %s4605_s10, %s4600_s1 }
  0xe5   : > { %p4609_p2 = scmp.lt.u32.totalorder %s4600_s1, %s5150_s17 }
  0xe6   : > { %s5177_s11 = scalar_lea.hbm %s5911_s12, %s4999_s14  ;;  %p4604_p1 = pneg %p4603_p8 }
  0xe7   : > { %p4608_p13 = por %p4607_p3, %p4606_p11 }
  0xe9   : > { %p4610_p4 = por %p4609_p2, %p4608_p13 }
  0xeb   : > { %p4611_p6 = pnand %p4610_p4, %p4604_p1 }
  0xed   : > { %4614 = shalt.err (!%p4611_p6)
}
  0xee   : > { %s4615_s14 = scalar_lea.vmem %s5171_s29, 1024  ;;  %s4784_s16 = smov [#allocation11]  }
  0xef   : > { %p4616_p0 = scmp.ne.s32.totalorder %s5171_s29, %s4615_s14  ;;  %s4620_s25 = sshll.u32 %s4784_s16, 4  ;;  %s4621_s25 = int_to_ptr.vmem [resolvable:$false] %s4620_s25 }
  0xf0   : > { %s4622_s5 = scalar_lea.vmem %s4621_s25, 2048  ;;  %p4623_p5 = scmp.lt.s32.totalorder %s5171_s29, %s4621_s25 }
  0xf1   : > { %p4618_p7 = pnand %p4616_p0, %p5912_p10  ;;  %p4624_p9 = scmp.lt.s32.totalorder %s4622_s5, %s4615_s14 }
  0xf3   : > { %p4619_p12 = pneg %p4618_p7  ;;  %p4625_p8 = por %p4624_p9, %p4623_p5 }
  0xf5   : > { %p4626_p11 = pnand %p4625_p8, %p4619_p12 }
  0xf7   : > { %4629 = shalt.err (!%p4626_p11)
}
  0xf8   : > { %p5913_p1 = scmp.ne.s32.totalorder %s5896_s3, 0  ;;  %s5914_s23 = smov 4  }
  0xf9   : > { %s5915_s22 = smov 64   ;;  %s5916_s2 = scalar_lea.sflag [#allocation10], %s4955_s21 }
  0xfa   : > { %4151 = dma.hbm_to_vmem [thread:$0]  (!%p5913_p1), %s5150_s17, 1024, %s5171_s29, %s5916_s2, %s5915_s22, %s5915_s22, %s5914_s23  }
  0xfb   : > { %s716_s28 = scalar_lea.vmem [#allocation14], %s4972_s30  ;;  %s4630_s15 = scalar_lea.hbm %s5177_s11, 1024 }
  0xfc   : > { %s723_s13 = sshll.u32 %s716_s28, 4  ;;  %p4631_p3 = scmp.ne.s32.totalorder %s5177_s11, %s4630_s15  ;;  %s5209_s13 = int_to_ptr.vmem [resolvable:$true] %s723_s13 }
  0xfd   : > { %s4635_s7 = scalar_lea.hbm %s5911_s12, 2048  ;;  %p4636_p4 = scmp.lt.u32.totalorder %s5177_s11, %s5911_s12 }
  0xfe   : > { %p4633_p13 = pnand %p4631_p3, %p5912_p10  ;;  %p4637_p6 = scmp.lt.u32.totalorder %s4635_s7, %s4630_s15 }
  0xff   : > { %p4639_p7 = scmp.lt.u32.totalorder %s4630_s15, %s5177_s11 }
 0x100   : > { %p4634_p2 = pneg %p4633_p13  ;;  %p4638_p0 = por %p4637_p6, %p4636_p4 }
 0x102   : > { %p4640_p12 = por %p4639_p7, %p4638_p0 }
 0x104   : > { %p4641_p5 = pnand %p4640_p12, %p4634_p2 }
 0x106   : > { %4644 = shalt.err (!%p4641_p5)
}
 0x107   : > { %s4645_s30 = scalar_lea.vmem %s5209_s13, 1024  ;;  %s4785_s17 = smov [#allocation14]  }
 0x108   : > { %p4646_p9 = scmp.ne.s32.totalorder %s5209_s13, %s4645_s30  ;;  %s4650_s29 = sshll.u32 %s4785_s17, 4  ;;  %s4651_s29 = int_to_ptr.vmem [resolvable:$false] %s4650_s29 }
 0x109   : > { %s4652_s27 = scalar_lea.vmem %s4651_s29, 2048  ;;  %p4653_p3 = scmp.lt.s32.totalorder %s5209_s13, %s4651_s29 }
 0x10a   : > { %p4648_p8 = pnand %p4646_p9, %p5912_p10  ;;  %p4654_p13 = scmp.lt.s32.totalorder %s4652_s27, %s4645_s30 }
 0x10c   : > { %p4649_p11 = pneg %p4648_p8  ;;  %p4655_p4 = por %p4654_p13, %p4653_p3 }
 0x10e   : > { %p4656_p6 = pnand %p4655_p4, %p4649_p11 }
 0x110   : > { %4659 = shalt.err (!%p4656_p6)
}
 0x111   : > { %s5917_s14 = scalar_lea.sflag [#allocation13], %s4955_s21  ;;  %s4660_s16 = scalar_lea.hbm %s5123_s19, 4096 }
 0x112   : > { %4157 = dma.hbm_to_vmem [thread:$0]  (!%p5913_p1), %s5177_s11, 1024, %s5209_s13, %s5917_s14, %s5915_s22, %s5915_s22, %s5914_s23  }
 0x113   : > { %p4661_p2 = scmp.ne.s32.totalorder %s5123_s19, %s4660_s16  ;;  %s4665_s2 = scalar_lea.hbm %s5828_s18, 8192 }
 0x114   : > { %p4666_p12 = scmp.lt.u32.totalorder %s5123_s19, %s5828_s18  ;;  %p4667_p5 = scmp.lt.u32.totalorder %s4665_s2, %s4660_s16 }
 0x115   : > { %p4663_p0 = pnand %p4661_p2, %p5912_p10  ;;  %p4669_p8 = scmp.lt.u32.totalorder %s4660_s16, %s5123_s19 }
 0x116   : > { %p4668_p9 = por %p4667_p5, %p4666_p12 }
 0x117   : > { %p4664_p7 = pneg %p4663_p0 }
 0x118   : > { %p4670_p11 = por %p4669_p8, %p4668_p9 }
 0x11a   : > { %p4671_p3 = pnand %p4670_p11, %p4664_p7 }
 0x11c   : > { %4674 = shalt.err (!%p4671_p3)
}
 0x11d   : > { %s4675_s11 = scalar_lea.vmem %s5206_s20, 4096  ;;  %s4786_s13 = smov [#allocation17]  }
 0x11e   : > { %p4676_p13 = scmp.ne.s32.totalorder %s5206_s20, %s4675_s11  ;;  %s4680_s1 = sshll.u32 %s4786_s13, 4  ;;  %s4681_s1 = int_to_ptr.vmem [resolvable:$false] %s4680_s1 }
 0x11f   : > { %s4682_s26 = scalar_lea.vmem %s4681_s1, 8192  ;;  %p4683_p2 = scmp.lt.s32.totalorder %s5206_s20, %s4681_s1 }
 0x120   : > { %p4678_p4 = pnand %p4676_p13, %p5912_p10  ;;  %p4684_p0 = scmp.lt.s32.totalorder %s4682_s26, %s4675_s11 }
 0x122   : > { %p4679_p6 = pneg %p4678_p4  ;;  %p4685_p12 = por %p4684_p0, %p4683_p2 }
 0x124   : > { %p4686_p5 = pnand %p4685_p12, %p4679_p6 }
 0x126   : > { %4689 = shalt.err (!%p4686_p5)
}
 0x127   : > { %4163 = dma.hbm_to_vmem [thread:$0]  (!%p5913_p1), %s5123_s19, 4096, %s5206_s20, %s752_s6, %s5915_s22, %s5915_s22, %s5914_s23  }
 0x128   : > { %s5918_s0 = sld [smem:[#allocation31_spill]] }
 0x12e   : > { %p5919_p10 = scmp.ne.s32.totalorder %s5918_s0, 0 }
 0x12f   : > { %s5920_s7 = sld [smem:[#allocation27_spill]] (!%p5919_p10) }
 0x130   : > { %808 = sbr.rel (%p5919_p10) target bundleno = 4764 (0x129c), region = 100 }
 0x135   : > { %p5921_p7 = scmp.eq.s32.totalorder (!%p5919_p10), %s5920_s7, 0 }
 0x137   : > { %4733 = dma.done.wait (%p5921_p7), [#allocation4], 256   ;;  %p5922_p9 = pmov %p5921_p7 }
 0x138   : > { %p5923_p8 = pmov %p5921_p7 }
 0x139   : > { %4735 = vsyncadd (%p5922_p9), [#allocation4], 4294967040 }
 0x13a   : > { %4737 = dma.done.wait (%p5923_p8), [#allocation7], 32   ;;  %p5924_p11 = pmov %p5921_p7 }
 0x13b   : > { %s5925_s21 = sld [smem:[#allocation25_spill]]  ;;  %s5926_s3 = sld [smem:[#allocation30_spill]] }
 0x13c   : > { %4739 = vsyncadd (%p5924_p11), [#allocation7], 4294967264  ;;  %s822_s10 = sand.u32 1, %s5920_s7  }
 0x13d   : > { %s823_s20 = scalar_lea.sflag [#allocation10], %s822_s10 }
 0x141   : > { %s824_s6 = sand.u32 1, %s5925_s21   ;;  %p5927_p1 = scmp.ne.s32.totalorder %s5926_s3, 0 }
 0x142   : > { %s3655_s19 = sshll.u32 %s824_s6, 6 }
 0x143   : > { %s5275_s23 = scalar_lea.vmem [#allocation9], %s3655_s19 }
 0x144   : > { %4741 = dma.done.wait (%p5927_p1), %s823_s20, 2048  }
 0x145   : > { %4743 = vsyncadd (%p5927_p1), %s823_s20, 4294965248  ;;  %s5281_s22 = scalar_lea.vmem [#allocation11], %s3655_s19  ;;  %s841_s24 = scalar_lea.sflag [#allocation13], %s822_s10 }
 0x146   : > { %s5283_s30 = scalar_lea.vmem [#allocation12], %s3655_s19 }
 0x147   : > { %4745 = dma.done.wait (%p5927_p1), %s841_s24, 2048  }
 0x148   : > { %4747 = vsyncadd (%p5927_p1), %s841_s24, 4294965248  ;;  %s3659_s17 = sshll.u32 %s824_s6, 8  ;;  %s5289_s29 = scalar_lea.vmem [#allocation14], %s3655_s19 }
 0x149   : > { %s859_s27 = scalar_lea.sflag [#allocation16], %s822_s10  ;;  %s5291_s14 = scalar_lea.vmem [#allocation15], %s3659_s17 }
 0x14a   : > { %4749 = dma.done.wait (%p5927_p1), %s859_s27, 8192  }
 0x14b   : > { %4751 = vsyncadd (%p5927_p1), %s859_s27, 4294959104  ;;  %p979_p3 = scmp.lt.s32.totalorder %s5920_s7, 1  ;;  %s5932_s25 = sld [smem:[#allocation43_spill]] }
 0x14c   : > { %s5933_s9 = sld [smem:[#allocation45_spill]]  ;;  %s5934_s15 = sld [smem:[#allocation46_spill]] }
 0x14d   : > { %s5299_s16 = scalar_select %p979_p3, %s5920_s7, 1 }
 0x14e   : > { %s5935_s26 = sld [smem:[#allocation47_spill]]  ;;  %s5936_s6 = sld [smem:[#allocation50_spill]] }
 0x14f   : > { %s3661_s21 = sshll.u32 %s5299_s16, 2  ;;  %s5937_s27 = sld [smem:[#allocation49_spill]] }
 0x150   : > { %s5343_s8 = scalar_lea.vmem [#allocation17], %s3659_s17  ;;  %p5938_p13 = scmp.ne.s32.totalorder %s5920_s7, 0 }
 0x151   : > { %s993_s5 = scalar_lea.vmem %s5932_s25, %s5299_s16  ;;  %v1015_v0 = vld [vmem:[#allocation3] sm:$0xff] (!%p5938_p13)  ;;  %v1016_v1 = vld [vmem:[#allocation3 + $0x8] sm:$0xff] (!%p5938_p13) }
 0x152   : > { %s996_s2 = scalar_lea.vmem %s5933_s9, %s5299_s16  ;;  %s999_s11 = scalar_lea.vmem %s5934_s15, %s5299_s16  ;;  %1017 = vst [vmem:[#allocation2] sm:$0xff] (!%p5938_p13), %v1015_v0  ;;  %1018 = vst [vmem:[#allocation2 + $0x8] sm:$0xff] (!%p5938_p13), %v1016_v1 }
 0x153   : > { %1014 = sbr.rel (%p5938_p13) target bundleno = 346 (0x15a), region = 140 }
 0x154   : > { %s1002_s0 = scalar_lea.vmem %s5935_s26, %s5299_s16  ;;  %s1009_s19 = scalar_lea.vmem %s5936_s6, %s5299_s16 }
 0x155   : > { %s5341_s25 = scalar_lea.vmem %s5937_s27, %s3661_s21 }
 0x15a PF: > { %v1189_v2 = vld [vmem:[#allocation2] sm:$0xff]  ;;  %v1190_v3 = vld [vmem:[#allocation2 + $0x8] sm:$0xff]  ;;  %v4787_v6 = vmov 0.0   ;;  %v4240_v17 = vld [vmem:[%s5275_s23 + $0x10] sm:$0xff]   ;;  %vm4788_vm0 = vmmov 0   ;;  %s5939_s9 = sld [smem:[#allocation36_spill]] }
 0x15b   : > { %1191 = vadd.xlane.f32.xlu0 %v1189_v2  ;;  %v4236_v4 = vld [vmem:[%s5275_s23] sm:$0xff]   ;;  %3931 = vmatprep.subr.bf16.mxu0 %v4787_v6  ;;  %v4238_v15 = vld [vmem:[%s5275_s23 + $0x8] sm:$0xff]   ;;  %v4241_v18 = vld [vmem:[%s5281_s22 + $0x10] sm:$0xff]   ;;  %s5941_s17 = sld [smem:[#allocation37_spill]]  ;;  %s5943_s20 = sld [smem:[#allocation41_spill]]  ;;  %vm1534_vm1 = vcmask 261120  }
 0x15c   : > { %v4237_v5 = vld [vmem:[%s5281_s22] sm:$0xff]   ;;  %3951 = vmatprep.subr.bf16.mxu1 %v4787_v6  ;;  %3932 = vmatpush3.bf16.msra.mxu0 %v4236_v4  ;;  %v4239_v16 = vld [vmem:[%s5281_s22 + $0x8] sm:$0xff]   ;;  %v4242_v19 = vld [vmem:[%s5275_s23 + $0x18] sm:$0xff]   ;;  %s5945_s26 = sld [smem:[#allocation39_spill]]  ;;  %vm1661_vm2 = vcmask 1043456   ;;  %vm1633_vm4 = vcmask 64512  }
 0x15d   : > { %3952 = vmatpush3.bf16.msra.mxu1 %v4237_v5  ;;  %3933 = vmatprep.subr.bf16.mxu0 %v4787_v6  ;;  %v4243_v20 = vld [vmem:[%s5281_s22 + $0x18] sm:$0xff]   ;;  %v4244_v21 = vld [vmem:[%s5275_s23 + $0x20] sm:$0xff]   ;;  %v4246_v23 = vld [vmem:[%s5275_s23 + $0x28] sm:$0xff]   ;;  %s4790_s27 = smov 64   ;;  %s4791_s12 = smov 32   ;;  %vm2455_vm5 = vcmask 523264  }
 0x15e   : > { %3953 = vmatprep.subr.bf16.mxu1 %v4787_v6  ;;  %v4245_v22 = vld [vmem:[%s5281_s22 + $0x20] sm:$0xff]   ;;  %3947 = vmatprep.mubr.msk.bf16.mxu0 %vm4788_vm0, %v4787_v6  ;;  %v4247_v24 = vld [vmem:[%s5281_s22 + $0x28] sm:$0xff]   ;;  %v4248_v25 = vld [vmem:[%s5275_s23 + $0x30] sm:$0xff]   ;;  %vm2458_vm6 = vcmask 785408  }
 0x15f   : > { %1193 = vadd.xlane.f32.xlu0 %v1190_v3  ;;  %3967 = vmatprep.mubr.msk.bf16.mxu1 %vm4788_vm0, %v4787_v6  ;;  %v4249_v26 = vld [vmem:[%s5281_s22 + $0x30] sm:$0xff]   ;;  %v4250_v27 = vld [vmem:[%s5275_s23 + $0x38] sm:$0xff]   ;;  %v4252_v45 = vld [vmem:[%s5283_s30] sm:$0xff]  }
 0x160   : > { %3934 = vmatpush3.bf16.msra.mxu0 %v4238_v15  ;;  %v4251_v28 = vld [vmem:[%s5281_s22 + $0x38] sm:$0xff]   ;;  %s5940_s7 = scalar_lea.vmem %s5939_s9, %s5299_s16  ;;  %v4253_v47 = vld [vmem:[%s5283_s30 + $0x8] sm:$0xff]   ;;  %v4254_v48 = vld [vmem:[%s5283_s30 + $0x10] sm:$0xff]  }
 0x161   : > { %3954 = vmatpush3.bf16.msra.mxu1 %v4239_v16  ;;  %3935 = vmatprep.subr.bf16.mxu0 %v4787_v6  ;;  %v3663_v37 = vld [vmem:[%s5940_s7] ss:$0 sm:$0xff]  ;;  %s5942_s28 = scalar_lea.vmem %s5941_s17, %s5299_s16  ;;  %v4256_v50 = vld [vmem:[%s5283_s30 + $0x20] sm:$0xff]   ;;  %v4257_v51 = vld [vmem:[%s5283_s30 + $0x28] sm:$0xff]   ;;  %s5944_s15 = scalar_lea.vmem %s5943_s20, %s5299_s16 }
 0x162   : > { %3955 = vmatprep.subr.bf16.mxu1 %v4787_v6  ;;  %v3664_v41 = vld [vmem:[%s5942_s28] ss:$0 sm:$0xff]  ;;  %v4258_v52 = vld [vmem:[%s5283_s30 + $0x30] sm:$0xff]   ;;  %s5946_s21 = scalar_lea.vmem %s5945_s26, %s5299_s16 }
 0x163   : > { %v4255_v49 = vld [vmem:[%s5283_s30 + $0x18] sm:$0xff]  }
 0x164   : > { %3936 = vmatpush3.bf16.msra.mxu0 %v4240_v17  ;;  %v4259_v53 = vld [vmem:[%s5283_s30 + $0x38] sm:$0xff]  }
 0x165   : > { %3956 = vmatpush3.bf16.msra.mxu1 %v4241_v18  ;;  %3937 = vmatprep.subr.bf16.mxu0 %v4787_v6  ;;  %v3675_v54 = vld [vmem:[%s5944_s15] ss:$0 sm:$0xff] }
 0x166   : > { %3957 = vmatprep.subr.bf16.mxu1 %v4787_v6  ;;  %v3665_v1 = vld [vmem:[%s5946_s21] ss:$0 sm:$0xff] }
 0x168   : > { %3938 = vmatpush3.bf16.msra.mxu0 %v4242_v19 }
 0x169   : > { %3958 = vmatpush3.bf16.msra.mxu1 %v4243_v20  ;;  %3939 = vmatprep.subr.bf16.mxu0 %v4787_v6  ;;  %v1529_v20 = vlaneseq }
 0x16a   : > { %3959 = vmatprep.subr.bf16.mxu1 %v4787_v6 }
 0x16c   : > { %3940 = vmatpush3.bf16.msra.mxu0 %v4244_v21  ;;  %v5459_v21 = vshrl.u32 %v1529_v20, 7 }
 0x16d   : > { %3960 = vmatpush3.bf16.msra.mxu1 %v4245_v22  ;;  %3941 = vmatprep.subr.bf16.mxu0 %v4787_v6  ;;  %v1532_v22 = vand.u32 127, %v1529_v20 }
 0x16e   : > { %3961 = vmatprep.subr.bf16.mxu1 %v4787_v6 }
 0x16f   : > { %vm5462_vm3 = vcmp.le.s32.totalorder %v1532_v22, %v5459_v21 }
 0x170   : > { %3942 = vmatpush3.bf16.msra.mxu0 %v4246_v23 }
 0x171   : > { %3962 = vmatpush3.bf16.msra.mxu1 %v4247_v24  ;;  %3943 = vmatprep.subr.bf16.mxu0 %v4787_v6 }
 0x172   : > { %3963 = vmatprep.subr.bf16.mxu1 %v4787_v6 }
 0x174   : > { %3944 = vmatpush3.bf16.msra.mxu0 %v4248_v25 }
 0x175   : > { %3964 = vmatpush3.bf16.msra.mxu1 %v4249_v26  ;;  %3945 = vmatprep.subr.bf16.mxu0 %v4787_v6 }
 0x176   : > { %3965 = vmatprep.subr.bf16.mxu1 %v4787_v6 }
 0x178   : > { %3946 = vmatpush3.bf16.msra.mxu0 %v4250_v27 }
 0x179   : > { %3966 = vmatpush3.bf16.msra.mxu1 %v4251_v28  ;;  %3971 = vmatprep.subr.bf16.mxu0 %v4787_v6 }
 0x17a   : > { %3991 = vmatprep.subr.bf16.mxu1 %v4787_v6 }
 0x1e8   : > { %v1192_v7 = vpop.xlane.xlu0 %1191 }
 0x1e9   : > { %v1196_v8 = vmul.f32 0.0078125, %v1192_v7 }
 0x1eb   : > { %v1198_v9 = vsub.f32 %v1189_v2, %v1196_v8 }
 0x1ec   : > { %v1194_v10 = vpop.xlane.xlu0 %1193 }
 0x1ed   : > { %v1197_v11 = vmul.f32 0.0078125, %v1194_v10  ;;  %v1200_v12 = vmul.f32 %v1198_v9, %v1198_v9 }
 0x1ef   : > { %v1199_v13 = vsub.f32 %v1190_v3, %v1197_v11  ;;  %1202 = vadd.xlane.f32.xlu1 %v1200_v12  ;;  %v3684_v11 = vld [vmem:[%s993_s5] ss:$0 sm:$0xff]  ;;  %s4789_s5 = smov 96  }
 0x1f1   : > { %v1201_v14 = vmul.f32 %v1199_v13, %v1199_v13 }
 0x1f3   : > { %1204 = vadd.xlane.f32.xlu1 %v1201_v14 }
 0x27c   : > { %v1203_v29 = vpop.xlane.xlu1 %1202 }
 0x27d   : > { %v1206_v30 = vmul.f32 0.0078125, %v1203_v29 }
 0x27f   : > { %v1208_v31 = vadd.f32 1e-05, %v1206_v30 }
 0x280   : > { %v1205_v32 = vpop.xlane.xlu1 %1204 }
 0x281   : > { %4348 = vrsqrt.f32 %v1208_v31  ;;  %v1207_v33 = vmul.f32 0.0078125, %v1205_v32 }
 0x283   : > { %v1209_v34 = vadd.f32 1e-05, %v1207_v33 }
 0x285   : > { %4350 = vrsqrt.f32 %v1209_v34 }
 0x28b   : > { %v4349_v35 = vpop.eup %4348 }
 0x28c   : > { %v1212_v36 = vmul.f32 %v4349_v35, %v1198_v9 }
 0x28e   : > { %v1220_v40 = vmul.f32 %v3663_v37, %v1212_v36 }
 0x28f   : > { %v4351_v38 = vpop.eup %4350 }
 0x290   : > { %v1213_v39 = vmul.f32 %v4351_v38, %v1199_v13  ;;  %v1228_v43 = vadd.f32 %v3664_v41, %v1220_v40 }
 0x292   : > { %v1221_v42 = vmul.f32 %v3663_v37, %v1213_v39 }
 0x294   : > { %v1229_v44 = vadd.f32 %v3664_v41, %v1221_v42 }
 0x296   : > { %v3812_v46 = vpack.c.bf16 %v1229_v44, %v1228_v43 }
 0x298   : > { %3948 = vmatmul.mubr.bf16.vlgmr.msra.gmra.mrb[0].mxu0 %v3812_v46  ;;  %3968 = vmatmul.mubr.bf16.vlgmr.msra.gmra.mrb[0].mxu1 %v3812_v46 }
 0x299   : > { %3972 = vmatpush3.bf16.msra.mxu0 %v4252_v45  ;;  %3987 = vmatprep.mubr.msk.bf16.mxu0 %vm4788_vm0, %v4787_v6 }
 0x29a   : > { %3973 = vmatprep.subr.bf16.mxu0 %v4787_v6  ;;  %3993 = vmatprep.mubr.msk.bf16.mxu1 %vm4788_vm0, %v4787_v6 }
 0x29d   : > { %3974 = vmatpush3.bf16.msra.mxu0 %v4253_v47 }
 0x29e   : > { %3975 = vmatprep.subr.bf16.mxu0 %v4787_v6 }
 0x2a1   : > { %3976 = vmatpush3.bf16.msra.mxu0 %v4254_v48 }
 0x2a2   : > { %3977 = vmatprep.subr.bf16.mxu0 %v4787_v6 }
 0x2a5   : > { %3978 = vmatpush3.bf16.msra.mxu0 %v4255_v49 }
 0x2a6   : > { %3979 = vmatprep.subr.bf16.mxu0 %v4787_v6 }
 0x2a9   : > { %3980 = vmatpush3.bf16.msra.mxu0 %v4256_v50 }
 0x2aa   : > { %3981 = vmatprep.subr.bf16.mxu0 %v4787_v6 }
 0x2ad   : > { %3982 = vmatpush3.bf16.msra.mxu0 %v4257_v51 }
 0x2ae   : > { %3983 = vmatprep.subr.bf16.mxu0 %v4787_v6 }
 0x2b1   : > { %3984 = vmatpush3.bf16.msra.mxu0 %v4258_v52 }
 0x2b2   : > { %3985 = vmatprep.subr.bf16.mxu0 %v4787_v6 }
 0x2b5   : > { %3986 = vmatpush3.bf16.msra.mxu0 %v4259_v53 }
 0x2b6   : > { %4039 = vmatprep.subr.bf16.mxu0 %v4787_v6 }
 0x2b8   : > { %3988 = vmatmul.mubr.bf16.vlgmr.msra.gmra.mrb[4].mxu0 %v3812_v46 }
 0x2b9   : > { %4041 = vmatprep.mubr.msk.bf16.mxu0 %vm4788_vm0, %v4787_v6 }
 0x36b   : > { %v1326_v55 = vpop.f32.mrb[0].mxu0  ;;  %v1421_v56 = vpop.f32.mrb[0].mxu1 }
 0x36c   : > { %v1422_v57 = vadd.f32 %v3675_v54, %v1421_v56  ;;  %v3949_v58 = vpop.f32.mrb[1].mxu0  ;;  %v3969_v59 = vpop.f32.mrb[1].mxu1  ;;  %v1327_v4 = vadd.f32 %v3665_v1, %v1326_v55 }
 0x36d   : > { %v1329_v60 = vpop.f32.mrb[2].mxu0  ;;  %v1424_v61 = vpop.f32.mrb[2].mxu1 }
 0x36e   : > { %v5422_v62 = vpack.c.bf16 %v1422_v57, %v1422_v57  ;;  %v3950_v63 = vpop.f32.mrb[3].mxu0  ;;  %v3970_v0 = vpop.f32.mrb[3].mxu1  ;;  %v1425_v2 = vadd.f32 %v3675_v54, %v1424_v61  ;;  %v5434_v7 = vpack.c.bf16 %v1327_v4, %v1327_v4  ;;  %v1330_v9 = vadd.f32 %v3665_v1, %v1329_v60 }
 0x370   : > { %v1539_v3 = vsel %vm1534_vm1, %v5422_v62, 0  ;;  %v5432_v5 = vpack.c.bf16 %v1425_v2, %v1425_v2  ;;  %v5443_v10 = vpack.c.bf16 %v1330_v9, %v1330_v9 }
 0x371   : > { %3992 = vmatpush3.bf16.xpose.msra.mxu1 %v1539_v3 }
 0x372   : > { %3997 = vmatprep.subr.bf16.mxu1 %v4787_v6  ;;  %v1585_v8 = vsel %vm1534_vm1, %v5432_v5, 0 }
 0x378   : > { %3994 = vmatmul.mubr.msk.bf16.vlgmr.msra.gmra.mrb[4].mxu1 %vm1534_vm1, %v5434_v7 }
 0x379   : > { %3998 = vmatpush3.bf16.xpose.msra.mxu1 %v1585_v8  ;;  %3999 = vmatprep.mubr.msk.bf16.mxu1 %vm4788_vm0, %v4787_v6 }
 0x37a   : > { %4003 = vmatprep.subr.bf16.mxu1 %v4787_v6 }
 0x380   : > { %4000 = vmatmul.mubr.msk.bf16.vlgmr.msra.gmra.mrb[8].mxu1 %vm1534_vm1, %v5443_v10 }
 0x381   : > { %4005 = vmatprep.mubr.msk.bf16.mxu1 %vm4788_vm0, %v4787_v6 }
 0x38b   : > { %v1516_v12 = vpop.f32.mrb[4].mxu0 }
 0x38c   : > { %v1517_v13 = vadd.f32 %v3684_v11, %v1516_v12  ;;  %v3989_v14 = vpop.f32.mrb[5].mxu0 }
 0x38d   : > { %v1519_v15 = vpop.f32.mrb[6].mxu0 }
 0x38e   : > { %v5454_v16 = vpack.c.bf16 %v1517_v13, %v1517_v13  ;;  %v1520_v17 = vadd.f32 %v3684_v11, %v1519_v15  ;;  %v3990_v18 = vpop.f32.mrb[7].mxu0 }
 0x390   : > { %v1663_v19 = vsel %vm1661_vm2, %v5454_v16, 0  ;;  %v5482_v51 = vpack.c.bf16 %v1520_v17, %v1520_v17 }
 0x391   : > { %4004 = vmatpush3.bf16.msra.mxu1 %v1663_v19 }
 0x392   : > { %4009 = vmatprep.subr.bf16.mxu1 %v4787_v6  ;;  %v1709_v54 = vsel %vm1661_vm2, %v5482_v51, 0 }
 0x44b   : > { %v1575_v23 = vpop.f32.mrb[4].mxu1 }
 0x44c   : > { %v1627_v25 = vmul.f32 0.17677669, %v1575_v23  ;;  %v3995_v26 = vpop.f32.mrb[5].mxu1 }
 0x44d   : > { %v1578_v27 = vpop.f32.mrb[6].mxu1 }
 0x44e   : > { %v3996_v28 = vpop.f32.mrb[7].mxu1  ;;  %v1631_v29 = vsel %vm5462_vm3, %v1627_v25, -1e+09 }
 0x44f   : > { %v1634_v30 = vsel %vm1633_vm4, %v1631_v29, -inf }
 0x450   : > { %1635 = vmax.xlane.f32.xlu0 %v1634_v30 }
 0x453   : > { %v1621_v31 = vpop.f32.mrb[8].mxu1 }
 0x454   : > { %v1628_v32 = vmul.f32 0.17677669, %v1621_v31  ;;  %v4001_v33 = vpop.f32.mrb[9].mxu1 }
 0x455   : > { %v1624_v34 = vpop.f32.mrb[10].mxu1 }
 0x456   : > { %v4002_v35 = vpop.f32.mrb[11].mxu1  ;;  %v1632_v36 = vsel %vm5462_vm3, %v1628_v32, -1e+09 }
 0x457   : > { %v1637_v37 = vsel %vm1633_vm4, %v1632_v36, -inf }
 0x458   : > { %1638 = vmax.xlane.f32.xlu1 %v1637_v37 }
 0x4dd   : > { %v1636_v38 = vpop.xlane.xlu0 %1635 }
 0x4de   : > { %v1640_v39 = vsub.f32 %v1631_v29, %v1636_v38 }
 0x4e0   : > { %v1642_v40 = vmul.f32 1.442695, %v1640_v39 }
 0x4e2   : > { %4352 = vpow2.f32 %v1642_v40 }
 0x4e5   : > { %v1639_v41 = vpop.xlane.xlu1 %1638 }
 0x4e6   : > { %v1641_v42 = vsub.f32 %v1632_v36, %v1639_v41 }
 0x4e8   : > { %v1644_v43 = vmul.f32 1.442695, %v1641_v42 }
 0x4ea   : > { %4354 = vpow2.f32 %v1644_v43 }
 0x4ec   : > { %v4353_v44 = vpop.eup %4352 }
 0x4ed   : > { %v1646_v45 = vsel %vm1633_vm4, %v4353_v44, 0.0 }
 0x4ee   : > { %1647 = vadd.xlane.f32.xlu0 %v1646_v45 }
 0x4f4   : > { %v4355_v46 = vpop.eup %4354 }
 0x4f5   : > { %v1649_v47 = vsel %vm1633_vm4, %v4355_v46, 0.0 }
 0x4f6   : > { %1650 = vadd.xlane.f32.xlu1 %v1649_v47 }
 0x504   : > { %1755 = vrot.lane.b32.xlu0 %v5422_v62, %s4789_s5 }
 0x507   : > { %1752 = vrot.lane.b32.xlu1 %v5434_v7, %s4789_s5 }
 0x50b   : > { %1807 = vrot.lane.b32.xlu1 %v5432_v5, %s4789_s5 }
 0x50f   : > { %1804 = vrot.lane.b32.xlu1 %v5443_v10, %s4789_s5 }
 0x57b   : > { %v1648_v48 = vpop.xlane.xlu0 %1647 }
 0x57c   : > { %4356 = vrcp.f32 %v1648_v48 }
 0x57f   : > { %v1756_v57 = vpop.permute.xlu0 %1755 }
 0x580   : > { %v1761_v60 = vsel %vm1534_vm1, %v1756_v57, 0 }
 0x583   : > { %v1651_v49 = vpop.xlane.xlu1 %1650 }
 0x584   : > { %4358 = vrcp.f32 %v1651_v49 }
 0x586   : > { %v4357_v50 = vpop.eup %4356 }
 0x587   : > { %v1653_v52 = vmul.f32 %v4357_v50, %v4353_v44  ;;  %v1753_v59 = vpop.permute.xlu1 %1752 }
 0x589   : > { %v1656_v53 = vpack.c.bf16 %v1653_v52, %v1653_v52 }
 0x58b   : > { %4006 = vmatmul.mubr.msk.bf16.vlgmr.msra.gmra.mrb[12].mxu1 %vm1633_vm4, %v1656_v53  ;;  %v1808_v61 = vpop.permute.xlu1 %1807 }
 0x58c   : > { %4010 = vmatpush3.bf16.msra.mxu1 %v1709_v54  ;;  %4011 = vmatprep.mubr.msk.bf16.mxu1 %vm4788_vm0, %v4787_v6  ;;  %v1813_v63 = vsel %vm1534_vm1, %v1808_v61, 0 }
 0x58d   : > { %4015 = vmatprep.subr.bf16.mxu1 %v4787_v6 }
 0x58e   : > { %v4359_v55 = vpop.eup %4358 }
 0x58f   : > { %v1655_v56 = vmul.f32 %v4359_v55, %v4355_v46  ;;  %v1805_v0 = vpop.permute.xlu1 %1804 }
 0x591   : > { %v1657_v58 = vpack.c.bf16 %v1655_v56, %v1655_v56 }
 0x593   : > { %4012 = vmatmul.mubr.msk.bf16.vlgmr.msra.gmra.mrb[16].mxu1 %vm1633_vm4, %v1657_v58 }
 0x594   : > { %4017 = vmatprep.mubr.msk.bf16.mxu1 %vm4788_vm0, %v4787_v6 }
 0x595   : > { %4016 = vmatpush3.bf16.xpose.msra.mxu1 %v1761_v60 }
 0x596   : > { %4021 = vmatprep.subr.bf16.mxu1 %v4787_v6 }
 0x59c   : > { %4018 = vmatmul.mubr.msk.bf16.vlgmr.msra.gmra.mrb[20].mxu1 %vm1534_vm1, %v1753_v59 }
 0x59d   : > { %4022 = vmatpush3.bf16.xpose.msra.mxu1 %v1813_v63  ;;  %4023 = vmatprep.mubr.msk.bf16.mxu1 %vm4788_vm0, %v4787_v6 }
 0x59e   : > { %4027 = vmatprep.subr.bf16.mxu1 %v4787_v6 }
 0x5a4   : > { %4024 = vmatmul.mubr.msk.bf16.vlgmr.msra.gmra.mrb[24].mxu1 %vm1534_vm1, %v1805_v0 }
 0x5a5   : > { %4029 = vmatprep.mubr.msk.bf16.mxu1 %vm4788_vm0, %v4787_v6 }
 0x65e   : > { %v5503_v1 = vpop.f32.mrb[12].mxu1 }
 0x65f   : > { %v4007_v2 = vpop.f32.mrb[13].mxu1 }
 0x660   : > { %v1702_v3 = vpop.f32.mrb[14].mxu1 }
 0x661   : > { %v4008_v4 = vpop.f32.mrb[15].mxu1 }
 0x666   : > { %v5505_v8 = vpop.f32.mrb[16].mxu1 }
 0x667   : > { %v4013_v9 = vpop.f32.mrb[17].mxu1 }
 0x668   : > { %v1748_v11 = vpop.f32.mrb[18].mxu1 }
 0x669   : > { %v4014_v12 = vpop.f32.mrb[19].mxu1 }
 0x66f   : > { %v1797_v13 = vpop.f32.mrb[20].mxu1 }
 0x670   : > { %v1855_v14 = vmul.f32 0.17677669, %v1797_v13  ;;  %v4019_v15 = vpop.f32.mrb[21].mxu1 }
 0x671   : > { %v1800_v17 = vpop.f32.mrb[22].mxu1 }
 0x672   : > { %v4020_v18 = vpop.f32.mrb[23].mxu1  ;;  %v1857_v19 = vsel %vm5462_vm3, %v1855_v14, -1e+09 }
 0x673   : > { %v1859_v20 = vsel %vm1633_vm4, %v1857_v19, -inf }
 0x674   : > { %1860 = vmax.xlane.f32.xlu0 %v1859_v20 }
 0x677   : > { %v1849_v22 = vpop.f32.mrb[24].mxu1 }
 0x678   : > { %v1856_v23 = vmul.f32 0.17677669, %v1849_v22  ;;  %v4025_v25 = vpop.f32.mrb[25].mxu1 }
 0x679   : > { %v1852_v26 = vpop.f32.mrb[26].mxu1 }
 0x67a   : > { %v4026_v27 = vpop.f32.mrb[27].mxu1  ;;  %v1858_v28 = vsel %vm5462_vm3, %v1856_v23, -1e+09 }
 0x67b   : > { %v1862_v29 = vsel %vm1633_vm4, %v1858_v28, -inf }
 0x67c   : > { %1863 = vmax.xlane.f32.xlu1 %v1862_v29 }
 0x68d   : > { %1933 = vrot.lane.b32.xlu1 %v5482_v51, %s4789_s5 }
 0x691   : > { %1983 = vrot.lane.b32.xlu1 %v5422_v62, %s4790_s27 }
 0x695   : > { %2033 = vrot.lane.b32.xlu1 %v5432_v5, %s4790_s27 }
 0x699   : > { %2031 = vrot.lane.b32.xlu1 %v5443_v10, %s4790_s27 }
 0x701   : > { %v1861_v30 = vpop.xlane.xlu0 %1860 }
 0x702   : > { %v1865_v31 = vsub.f32 %v1857_v19, %v1861_v30 }
 0x704   : > { %v1867_v32 = vmul.f32 1.442695, %v1865_v31 }
 0x706   : > { %4360 = vpow2.f32 %v1867_v32 }
 0x709   : > { %v1864_v33 = vpop.xlane.xlu1 %1863 }
 0x70a   : > { %v1866_v34 = vsub.f32 %v1858_v28, %v1864_v33 }
 0x70c   : > { %v1869_v35 = vmul.f32 1.442695, %v1866_v34 }
 0x70d   : > { %v1934_v36 = vpop.permute.xlu1 %1933 }
 0x70e   : > { %4362 = vpow2.f32 %v1869_v35  ;;  %v1939_v52 = vsel %vm1661_vm2, %v1934_v36, 0 }
 0x710   : > { %v4361_v37 = vpop.eup %4360 }
 0x711   : > { %v1984_v38 = vpop.permute.xlu1 %1983  ;;  %v1871_v39 = vsel %vm1633_vm4, %v4361_v37, 0.0 }
 0x712   : > { %v1989_v40 = vsel %vm1534_vm1, %v1984_v38, 0  ;;  %1872 = vadd.xlane.f32.xlu0 %v1871_v39 }
 0x713   : > { %4040 = vmatpush3.bf16.xpose.msra.mxu0 %v1989_v40 }
 0x714   : > { %4051 = vmatprep.subr.bf16.mxu0 %v4787_v6 }
 0x715   : > { %v2034_v56 = vpop.permute.xlu1 %2033 }
 0x716   : > { %v2039_v57 = vsel %vm1534_vm1, %v2034_v56, 0 }
 0x718   : > { %v4363_v41 = vpop.eup %4362 }
 0x719   : > { %v1874_v42 = vsel %vm1633_vm4, %v4363_v41, 0.0  ;;  %v2032_v58 = vpop.permute.xlu1 %2031 }
 0x71a   : > { %1875 = vadd.xlane.f32.xlu0 %v1874_v42 }
 0x730   : > { %1884 = vrot.lane.b32.xlu0 %v5454_v16, %s4789_s5 }
 0x734   : > { %1981 = vrot.lane.b32.xlu0 %v5434_v7, %s4790_s27 }
 0x79f   : > { %v1873_v43 = vpop.xlane.xlu0 %1872 }
 0x7a0   : > { %4364 = vrcp.f32 %v1873_v43 }
 0x7a7   : > { %v1876_v44 = vpop.xlane.xlu0 %1875 }
 0x7a8   : > { %4366 = vrcp.f32 %v1876_v44 }
 0x7aa   : > { %v4365_v45 = vpop.eup %4364 }
 0x7ab   : > { %v1878_v46 = vmul.f32 %v4365_v45, %v4361_v37  ;;  %v1885_v47 = vpop.permute.xlu0 %1884 }
 0x7ac   : > { %v1890_v48 = vsel %vm1661_vm2, %v1885_v47, 0 }
 0x7ad   : > { %4028 = vmatpush3.bf16.msra.mxu1 %v1890_v48  ;;  %v1881_v49 = vpack.c.bf16 %v1878_v46, %v1878_v46 }
 0x7ae   : > { %4033 = vmatprep.subr.bf16.mxu1 %v4787_v6 }
 0x7af   : > { %v1982_v50 = vpop.permute.xlu0 %1981 }
 0x7b0   : > { %4030 = vmatmul.mubr.msk.bf16.vlgmr.msra.gmra.mrb[28].mxu1 %vm1633_vm4, %v1881_v49  ;;  %4042 = vmatmul.mubr.msk.bf16.vlgmr.msra.gmra.mrb[8].mxu0 %vm1534_vm1, %v1982_v50 }
 0x7b1   : > { %4034 = vmatpush3.bf16.msra.mxu1 %v1939_v52  ;;  %4035 = vmatprep.mubr.msk.bf16.mxu1 %vm4788_vm0, %v4787_v6 }
 0x7b2   : > { %v4367_v53 = vpop.eup %4366  ;;  %4045 = vmatprep.subr.bf16.mxu1 %v4787_v6  ;;  %4053 = vmatprep.mubr.msk.bf16.mxu0 %vm4788_vm0, %v4787_v6 }
 0x7b3   : > { %v1880_v54 = vmul.f32 %v4367_v53, %v4363_v41 }
 0x7b5   : > { %v1882_v55 = vpack.c.bf16 %v1880_v54, %v1880_v54 }
 0x7b8   : > { %4036 = vmatmul.mubr.msk.bf16.vlgmr.msra.gmra.mrb[32].mxu1 %vm1633_vm4, %v1882_v55 }
 0x7b9   : > { %4047 = vmatprep.mubr.msk.bf16.mxu1 %vm4788_vm0, %v4787_v6 }
 0x7ba   : > { %4046 = vmatpush3.bf16.xpose.msra.mxu1 %v2039_v57 }
 0x7bb   : > { %4057 = vmatprep.subr.bf16.mxu1 %v4787_v6 }
 0x7c1   : > { %4048 = vmatmul.mubr.msk.bf16.vlgmr.msra.gmra.mrb[36].mxu1 %vm1534_vm1, %v2032_v58 }
 0x7c2   : > { %4059 = vmatprep.mubr.msk.bf16.mxu1 %vm4788_vm0, %v4787_v6 }
 0x883   : > { %v5547_v59 = vpop.f32.mrb[28].mxu1  ;;  %v2025_v60 = vpop.f32.mrb[8].mxu0 }
 0x884   : > { %v2081_v61 = vmul.f32 0.17677669, %v2025_v60  ;;  %v4031_v63 = vpop.f32.mrb[29].mxu1  ;;  %v4043_v0 = vpop.f32.mrb[9].mxu0 }
 0x885   : > { %v1929_v2 = vpop.f32.mrb[30].mxu1  ;;  %v2028_v3 = vpop.f32.mrb[10].mxu0 }
 0x886   : > { %v4032_v4 = vpop.f32.mrb[31].mxu1  ;;  %v4044_v9 = vpop.f32.mrb[11].mxu0  ;;  %v2083_v11 = vsel %vm5462_vm3, %v2081_v61, -1e+09 }
 0x887   : > { %v2085_v12 = vsel %vm1633_vm4, %v2083_v11, -inf }
 0x888   : > { %2086 = vmax.xlane.f32.xlu0 %v2085_v12 }
 0x88b   : > { %v5552_v13 = vpop.f32.mrb[32].mxu1 }
 0x88c   : > { %v4221_v14 = vpack.i.bf16 %v5552_v13, %v5547_v59  ;;  %v4037_v15 = vpop.f32.mrb[33].mxu1 }
 0x88d   : > { %v1978_v17 = vpop.f32.mrb[34].mxu1 }
 0x88e   : > { %v4038_v18 = vpop.f32.mrb[35].mxu1 }
 0x894   : > { %v2075_v19 = vpop.f32.mrb[36].mxu1 }
 0x895   : > { %v2082_v20 = vmul.f32 0.17677669, %v2075_v19  ;;  %v4049_v22 = vpop.f32.mrb[37].mxu1 }
 0x896   : > { %v2078_v23 = vpop.f32.mrb[38].mxu1 }
 0x897   : > { %v4050_v25 = vpop.f32.mrb[39].mxu1  ;;  %v2084_v26 = vsel %vm5462_vm3, %v2082_v20, -1e+09 }
 0x898   : > { %v2088_v27 = vsel %vm1633_vm4, %v2084_v26, -inf }
 0x899   : > { %2089 = vmax.xlane.f32.xlu1 %v2088_v27 }
 0x8aa   : > { %2157 = vrot.lane.b32.xlu1 %v5482_v51, %s4790_s27 }
 0x8ae   : > { %2207 = vrot.lane.b32.xlu1 %v5422_v62, %s4791_s12 }
 0x8b2   : > { %2257 = vrot.lane.b32.xlu1 %v5432_v5, %s4791_s12 }
 0x8b6   : > { %2255 = vrot.lane.b32.xlu1 %v5443_v10, %s4791_s12 }
 0x915   : > { %v2087_v28 = vpop.xlane.xlu0 %2086 }
 0x916   : > { %v2091_v29 = vsub.f32 %v2083_v11, %v2087_v28 }
 0x918   : > { %v2093_v30 = vmul.f32 1.442695, %v2091_v29 }
 0x91a   : > { %4368 = vpow2.f32 %v2093_v30 }
 0x924   : > { %v4369_v31 = vpop.eup %4368 }
 0x925   : > { %v2097_v32 = vsel %vm1633_vm4, %v4369_v31, 0.0 }
 0x926   : > { %v2090_v33 = vpop.xlane.xlu1 %2089  ;;  %2098 = vadd.xlane.f32.xlu0 %v2097_v32 }
 0x927   : > { %v2092_v34 = vsub.f32 %v2084_v26, %v2090_v33 }
 0x929   : > { %v2095_v35 = vmul.f32 1.442695, %v2092_v34 }
 0x92a   : > { %v2158_v36 = vpop.permute.xlu1 %2157 }
 0x92b   : > { %4370 = vpow2.f32 %v2095_v35  ;;  %v2163_v62 = vsel %vm1661_vm2, %v2158_v36, 0 }
 0x92c   : > { %4058 = vmatpush3.bf16.msra.mxu1 %v2163_v62 }
 0x92d   : > { %4069 = vmatprep.subr.bf16.mxu1 %v4787_v6 }
 0x92e   : > { %v2208_v43 = vpop.permute.xlu1 %2207 }
 0x92f   : > { %v2213_v47 = vsel %vm1534_vm1, %v2208_v43, 0  ;;  %v4265_v43 = vld [vmem:[%s5289_s29 + $0x28] sm:$0xff]  }
 0x932   : > { %v2258_v46 = vpop.permute.xlu1 %2257 }
 0x933   : > { %v2263_v49 = vsel %vm1534_vm1, %v2258_v46, 0 }
 0x935   : > { %v4371_v5 = vpop.eup %4370 }
 0x936   : > { %v2100_v10 = vsel %vm1633_vm4, %v4371_v5, 0.0  ;;  %v2256_v52 = vpop.permute.xlu1 %2255 }
 0x937   : > { %2101 = vadd.xlane.f32.xlu0 %v2100_v10 }
 0x94d   : > { %2109 = vrot.lane.b32.xlu0 %v5454_v16, %s4790_s27 }
 0x951   : > { %2205 = vrot.lane.b32.xlu0 %v5434_v7, %s4791_s12 }
 0x9b3   : > { %v2099_v37 = vpop.xlane.xlu0 %2098 }
 0x9b4   : > { %4372 = vrcp.f32 %v2099_v37 }
 0x9be   : > { %v4373_v38 = vpop.eup %4372 }
 0x9bf   : > { %v2104_v40 = vmul.f32 %v4373_v38, %v4369_v31  ;;  %v4260_v38 = vld [vmem:[%s5289_s29] sm:$0xff]  }
 0x9c1   : > { %v2107_v44 = vpack.c.bf16 %v2104_v40, %v2104_v40  ;;  %v4262_v40 = vld [vmem:[%s5289_s29 + $0x10] sm:$0xff]  }
 0x9c4   : > { %v2102_v39 = vpop.xlane.xlu0 %2101 }
 0x9c5   : > { %4374 = vrcp.f32 %v2102_v39  ;;  %v4261_v39 = vld [vmem:[%s5289_s29 + $0x8] sm:$0xff]  }
 0x9c8   : > { %v2110_v41 = vpop.permute.xlu0 %2109 }
 0x9c9   : > { %v2115_v42 = vsel %vm1661_vm2, %v2110_v41, 0  ;;  %v4263_v41 = vld [vmem:[%s5289_s29 + $0x18] sm:$0xff]  }
 0x9ca   : > { %4052 = vmatpush3.bf16.msra.mxu0 %v2115_v42  ;;  %v4264_v42 = vld [vmem:[%s5289_s29 + $0x20] sm:$0xff]  }
 0x9cb   : > { %4063 = vmatprep.subr.bf16.mxu0 %v4787_v6 }
 0x9cc   : > { %v2206_v50 = vpop.permute.xlu0 %2205 }
 0x9cd   : > { %4054 = vmatmul.mubr.msk.bf16.vlgmr.msra.gmra.mrb[12].mxu0 %vm1633_vm4, %v2107_v44  ;;  %v4266_v44 = vld [vmem:[%s5289_s29 + $0x30] sm:$0xff]  }
 0x9ce   : > { %4065 = vmatprep.mubr.msk.bf16.mxu0 %vm4788_vm0, %v4787_v6 }
 0x9cf   : > { %v4375_v7 = vpop.eup %4374 }
 0x9d0   : > { %v2106_v45 = vmul.f32 %v4375_v7, %v4371_v5  ;;  %v4267_v7 = vld [vmem:[%s5289_s29 + $0x38] sm:$0xff]  }
 0x9d2   : > { %v2108_v48 = vpack.c.bf16 %v2106_v45, %v2106_v45 }
 0x9d3   : > { %4064 = vmatpush3.bf16.xpose.msra.mxu0 %v2213_v47 }
 0x9d4   : > { %4060 = vmatmul.mubr.msk.bf16.vlgmr.msra.gmra.mrb[40].mxu1 %vm1633_vm4, %v2108_v48  ;;  %4075 = vmatprep.subr.bf16.mxu0 %v4787_v6 }
 0x9d5   : > { %4070 = vmatpush3.bf16.xpose.msra.mxu1 %v2263_v49  ;;  %4071 = vmatprep.mubr.msk.bf16.mxu1 %vm4788_vm0, %v4787_v6 }
 0x9d6   : > { %4081 = vmatprep.subr.bf16.mxu1 %v4787_v6 }
 0x9da   : > { %4066 = vmatmul.mubr.msk.bf16.vlgmr.msra.gmra.mrb[16].mxu0 %vm1534_vm1, %v2206_v50 }
 0x9db   : > { %4077 = vmatprep.mubr.msk.bf16.mxu0 %vm4788_vm0, %v4787_v6 }
 0x9dc   : > { %4072 = vmatmul.mubr.msk.bf16.vlgmr.msra.gmra.mrb[44].mxu1 %vm1534_vm1, %v2256_v52 }
 0x9dd   : > { %4083 = vmatprep.mubr.msk.bf16.mxu1 %vm4788_vm0, %v4787_v6 }
 0xaa0   : > { %v2151_v53 = vpop.f32.mrb[12].mxu0 }
 0xaa1   : > { %v4055_v54 = vpop.f32.mrb[13].mxu0 }
 0xaa2   : > { %v2154_v55 = vpop.f32.mrb[14].mxu0 }
 0xaa3   : > { %v4056_v56 = vpop.f32.mrb[15].mxu0 }
 0xaa7   : > { %v2199_v57 = vpop.f32.mrb[40].mxu1 }
 0xaa8   : > { %v4226_v58 = vpack.i.bf16 %v2199_v57, %v2151_v53  ;;  %v4061_v60 = vpop.f32.mrb[41].mxu1 }
 0xaa9   : > { %v2202_v61 = vpop.f32.mrb[42].mxu1 }
 0xaaa   : > { %v4062_v63 = vpop.f32.mrb[43].mxu1 }
 0xaad   : > { %v2249_v0 = vpop.f32.mrb[16].mxu0 }
 0xaae   : > { %v2305_v2 = vmul.f32 0.17677669, %v2249_v0  ;;  %v4067_v3 = vpop.f32.mrb[17].mxu0 }
 0xaaf   : > { %v2252_v4 = vpop.f32.mrb[18].mxu0  ;;  %v2299_v9 = vpop.f32.mrb[44].mxu1 }
 0xab0   : > { %v2306_v11 = vmul.f32 0.17677669, %v2299_v9  ;;  %v4068_v12 = vpop.f32.mrb[19].mxu0  ;;  %v4073_v15 = vpop.f32.mrb[45].mxu1  ;;  %v2307_v17 = vsel %vm5462_vm3, %v2305_v2, -1e+09 }
 0xab1   : > { %v2302_v18 = vpop.f32.mrb[46].mxu1  ;;  %v2309_v19 = vsel %vm1633_vm4, %v2307_v17, -inf }
 0xab2   : > { %v4074_v20 = vpop.f32.mrb[47].mxu1  ;;  %2310 = vmax.xlane.f32.xlu0 %v2309_v19  ;;  %v2308_v22 = vsel %vm5462_vm3, %v2306_v11, -1e+09 }
 0xab3   : > { %v2312_v23 = vsel %vm1633_vm4, %v2308_v22, -inf  ;;  %v4420_v20 = vld [vmem:[#allocation2] sm:$0xff] }
 0xab4   : > { %2313 = vmax.xlane.f32.xlu1 %v2312_v23 }
 0xac5   : > { %2381 = vrot.lane.b32.xlu1 %v5482_v51, %s4791_s12 }
 0xac9   : > { %4222 = vrot.lane.b32.xlu1 %v4221_v14, %s4791_s12 }
 0xacd   : > { %4227 = vrot.lane.b32.xlu1 %v4226_v58, %s4790_s27 }
 0xb3f   : > { %v2311_v25 = vpop.xlane.xlu0 %2310 }
 0xb40   : > { %v2315_v26 = vsub.f32 %v2307_v17, %v2311_v25  ;;  %v3709_v17 = vld [vmem:[%s996_s2] ss:$0 sm:$0xff] }
 0xb41   : > { %v2314_v27 = vpop.xlane.xlu1 %2313 }
 0xb42   : > { %v2317_v28 = vmul.f32 1.442695, %v2315_v26  ;;  %v2316_v29 = vsub.f32 %v2308_v22, %v2314_v27  ;;  %v4421_v26 = vld [vmem:[#allocation2 + $0x8] sm:$0xff] }
 0xb44   : > { %4376 = vpow2.f32 %v2317_v28  ;;  %v2319_v24 = vmul.f32 1.442695, %v2316_v29  ;;  %v4268_v28 = vld [vmem:[%s5291_s14] ss:$16 sps:$4 sm:$0xff]   ;;  %v4270_v29 = vld [vmem:[%s5291_s14 + $0x4] ss:$16 sps:$4 sm:$0xff]  }
 0xb45   : > { %v2382_v30 = vpop.permute.xlu1 %2381 }
 0xb46   : > { %4378 = vpow2.f32 %v2319_v24  ;;  %v2387_v31 = vsel %vm1661_vm2, %v2382_v30, 0  ;;  %v4271_v24 = vld [vmem:[%s5291_s14 + $0x8] ss:$16 sps:$4 sm:$0xff]   ;;  %v4273_v30 = vld [vmem:[%s5291_s14 + $0xc] ss:$16 sps:$4 sm:$0xff]  }
 0xb47   : > { %4082 = vmatpush3.bf16.msra.mxu1 %v2387_v31  ;;  %v4276_v31 = vld [vmem:[%s5291_s14 + $0x24] ss:$16 sps:$4 sm:$0xff]  }
 0xb48   : > { %2793 = vmatprep.subr.bf16.mxu1 %v4270_v29  ;;  %v4320_v29 = vld [vmem:[%s5343_s8 + $0x48] sm:$0xff]  }
 0xb49   : > { %v4223_v55 = vpop.permute.xlu1 %4222 }
 0xb4a   : > { %v4225_v57 = vunpack.i.h.bf16 %v4223_v55  ;;  %v4224_v58 = vunpack.i.l.bf16 %v4223_v55  ;;  %v4312_v55 = vld [vmem:[%s5291_s14 + $0xe4] ss:$16 sps:$4 sm:$0xff]  }
 0xb4c   : > { %v2454_v63 = vsel %vm1534_vm1, %v5505_v8, %v4225_v57  ;;  %v2453_v0 = vsel %vm1534_vm1, %v5503_v1, %v4224_v58  ;;  %v4310_v57 = vld [vmem:[%s5291_s14 + $0xe0] ss:$16 sps:$4 sm:$0xff]   ;;  %v4313_v58 = vld [vmem:[%s5291_s14 + $0xe8] ss:$16 sps:$4 sm:$0xff]  }
 0xb4d   : > { %v4228_v56 = vpop.permute.xlu1 %4227 }
 0xb4e   : > { %v4377_v51 = vpop.eup %4376  ;;  %v4230_v60 = vunpack.i.h.bf16 %v4228_v56 }
 0xb4f   : > { %v2321_v32 = vsel %vm1633_vm4, %v4377_v51, 0.0 }
 0xb50   : > { %v4379_v33 = vpop.eup %4378  ;;  %2322 = vadd.xlane.f32.xlu0 %v2321_v32  ;;  %v2457_v4 = vsel %vm2455_vm5, %v2454_v63, %v4230_v60  ;;  %v4274_v32 = vld [vmem:[%s5291_s14 + $0x20] ss:$16 sps:$4 sm:$0xff]   ;;  %v4792_v60 = vmov 0  }
 0xb51   : > { %v2324_v59 = vsel %vm1633_vm4, %v4379_v33, 0.0 }
 0xb54   : > { %2325 = vadd.xlane.f32.xlu0 %v2324_v59 }
 0xb6a   : > { %2333 = vrot.lane.b32.xlu0 %v5454_v16, %s4791_s12 }
 0xbdd   : > { %v2323_v13 = vpop.xlane.xlu0 %2322 }
 0xbde   : > { %4380 = vrcp.f32 %v2323_v13 }
 0xbe1   : > { %v2326_v14 = vpop.xlane.xlu0 %2325 }
 0xbe2   : > { %4382 = vrcp.f32 %v2326_v14 }
 0xbe5   : > { %v2334_v34 = vpop.permute.xlu0 %2333 }
 0xbe6   : > { %v2339_v35 = vsel %vm1661_vm2, %v2334_v34, 0 }
 0xbe7   : > { %4076 = vmatpush3.bf16.msra.mxu0 %v2339_v35 }
 0xbe8   : > { %v4381_v36 = vpop.eup %4380  ;;  %4087 = vmatprep.subr.bf16.mxu0 %v4787_v6 }
 0xbe9   : > { %v2328_v62 = vmul.f32 %v4381_v36, %v4377_v51  ;;  %v4279_v51 = vld [vmem:[%s5291_s14 + $0x2c] ss:$16 sps:$4 sm:$0xff]  }
 0xbeb   : > { %v2331_v5 = vpack.c.bf16 %v2328_v62, %v2328_v62 }
 0xbec   : > { %v4383_v10 = vpop.eup %4382 }
 0xbed   : > { %v2330_v37 = vmul.f32 %v4383_v10, %v4379_v33  ;;  %4078 = vmatmul.mubr.msk.bf16.vlgmr.msra.gmra.mrb[20].mxu0 %vm1633_vm4, %v2331_v5  ;;  %v4277_v33 = vld [vmem:[%s5291_s14 + $0x28] ss:$16 sps:$4 sm:$0xff]   ;;  %v4282_v10 = vld [vmem:[%s5291_s14 + $0x44] ss:$16 sps:$4 sm:$0xff]  }
 0xbee   : > { %4103 = vmatprep.mubr.msk.bf16.mxu0 %vm4788_vm0, %v4787_v6  ;;  %4088 = vmatpush3.bf16.msra.mxu0 %v4260_v38  ;;  %v4283_v38 = vld [vmem:[%s5291_s14 + $0x48] ss:$16 sps:$4 sm:$0xff]  }
 0xbef   : > { %v2332_v16 = vpack.c.bf16 %v2330_v37, %v2330_v37  ;;  %4089 = vmatprep.subr.bf16.mxu0 %v4787_v6  ;;  %v4285_v37 = vld [vmem:[%s5291_s14 + $0x4c] ss:$16 sps:$4 sm:$0xff]  }
 0xbf1   : > { %4084 = vmatmul.mubr.msk.bf16.vlgmr.msra.gmra.mrb[48].mxu1 %vm1633_vm4, %v2332_v16  ;;  %v4280_v16 = vld [vmem:[%s5291_s14 + $0x40] ss:$16 sps:$4 sm:$0xff]  }
 0xbf2   : > { %4090 = vmatpush3.bf16.msra.mxu0 %v4261_v39  ;;  %2794 = vmatpush1.bf16.msra.mxu1 %v4268_v28  ;;  %v4288_v39 = vld [vmem:[%s5291_s14 + $0x64] ss:$16 sps:$4 sm:$0xff]  }
 0xbf3   : > { %4091 = vmatprep.subr.bf16.mxu0 %v4787_v6  ;;  %2795 = vmatprep.subr.bf16.mxu1 %v4276_v31  ;;  %v4319_v28 = vld [vmem:[%s5343_s8 + $0x80] sm:$0xff]   ;;  %v4323_v31 = vld [vmem:[%s5343_s8 + $0x88] sm:$0xff]  }
 0xbf4   : > { %2825 = vmatprep.mubr.bf16.mxu1 %v4792_v60 }
 0xbf6   : > { %4092 = vmatpush3.bf16.msra.mxu0 %v4262_v40  ;;  %2796 = vmatpush1.bf16.msra.mxu1 %v4274_v32  ;;  %v4291_v40 = vld [vmem:[%s5291_s14 + $0x6c] ss:$16 sps:$4 sm:$0xff]   ;;  %v4325_v32 = vld [vmem:[%s5343_s8 + $0xd0] sm:$0xff]  }
 0xbf7   : > { %4093 = vmatprep.subr.bf16.mxu0 %v4787_v6  ;;  %2797 = vmatprep.subr.bf16.mxu1 %v4282_v10  ;;  %v4335_v10 = vld [vmem:[%s5343_s8 + $0xa0] sm:$0xff]  }
 0xbfa   : > { %4094 = vmatpush3.bf16.msra.mxu0 %v4263_v41  ;;  %2798 = vmatpush1.bf16.msra.mxu1 %v4280_v16  ;;  %v4286_v41 = vld [vmem:[%s5291_s14 + $0x60] ss:$16 sps:$4 sm:$0xff]   ;;  %v4337_v16 = vld [vmem:[%s5343_s8 + $0xe8] sm:$0xff]  }
 0xbfb   : > { %4095 = vmatprep.subr.bf16.mxu0 %v4787_v6  ;;  %2799 = vmatprep.subr.bf16.mxu1 %v4288_v39  ;;  %v4339_v39 = vld [vmem:[%s5343_s8 + $0xa8] sm:$0xff]  }
 0xbfe   : > { %4096 = vmatpush3.bf16.msra.mxu0 %v4264_v42  ;;  %v4289_v42 = vld [vmem:[%s5291_s14 + $0x68] ss:$16 sps:$4 sm:$0xff]   ;;  %2800 = vmatpush1.bf16.msra.mxu1 %v4286_v41  ;;  %v4341_v41 = vld [vmem:[%s5343_s8 + $0xf0] sm:$0xff]  }
 0xbff   : > { %4097 = vmatprep.subr.bf16.mxu0 %v4787_v6 }
 0xc02   : > { %4098 = vmatpush3.bf16.msra.mxu0 %v4265_v43  ;;  %v4294_v43 = vld [vmem:[%s5291_s14 + $0x84] ss:$16 sps:$4 sm:$0xff]  }
 0xc03   : > { %4099 = vmatprep.subr.bf16.mxu0 %v4787_v6  ;;  %2801 = vmatprep.subr.bf16.mxu1 %v4294_v43  ;;  %v4343_v43 = vld [vmem:[%s5343_s8 + $0xb0] sm:$0xff]  }
 0xc06   : > { %4100 = vmatpush3.bf16.msra.mxu0 %v4266_v44  ;;  %v4297_v44 = vld [vmem:[%s5291_s14 + $0x8c] ss:$16 sps:$4 sm:$0xff]  }
 0xc07   : > { %4101 = vmatprep.subr.bf16.mxu0 %v4787_v6  ;;  %v4229_v6 = vunpack.i.l.bf16 %v4228_v56  ;;  %v4315_v56 = vld [vmem:[%s5291_s14 + $0xec] ss:$16 sps:$4 sm:$0xff]  }
 0xc09   : > { %v2456_v9 = vsel %vm2455_vm5, %v2453_v0, %v4229_v6 }
 0xc0a   : > { %4102 = vmatpush3.bf16.msra.mxu0 %v4267_v7  ;;  %v4292_v7 = vld [vmem:[%s5291_s14 + $0x80] ss:$16 sps:$4 sm:$0xff]  }
 0xc0b   : > { %2836 = vmatprep.subr.bf16.mxu0 %v4273_v30  ;;  %2802 = vmatpush1.bf16.msra.mxu1 %v4292_v7  ;;  %v4322_v30 = vld [vmem:[%s5343_s8 + $0x8] sm:$0xff]   ;;  %v4345_v7 = vld [vmem:[%s5343_s8 + $0xf8] sm:$0xff]  }
 0xcc0   : > { %v2375_v45 = vpop.f32.mrb[20].mxu0 }
 0xcc1   : > { %v4079_v46 = vpop.f32.mrb[21].mxu0 }
 0xcc2   : > { %v2378_v47 = vpop.f32.mrb[22].mxu0  ;;  %v4300_v46 = vld [vmem:[%s5291_s14 + $0xa4] ss:$16 sps:$4 sm:$0xff]  }
 0xcc3   : > { %v4080_v48 = vpop.f32.mrb[23].mxu0  ;;  %v4303_v47 = vld [vmem:[%s5291_s14 + $0xac] ss:$16 sps:$4 sm:$0xff]   ;;  %2803 = vmatprep.subr.bf16.mxu1 %v4300_v46 }
 0xcc4   : > { %v2423_v49 = vpop.f32.mrb[48].mxu1  ;;  %v4298_v48 = vld [vmem:[%s5291_s14 + $0xa0] ss:$16 sps:$4 sm:$0xff]   ;;  %v4347_v46 = vld [vmem:[%s5343_s8 + $0xb8] sm:$0xff]  }
 0xcc5   : > { %v4231_v50 = vpack.i.bf16 %v2423_v49, %v2375_v45  ;;  %v4085_v52 = vpop.f32.mrb[49].mxu1  ;;  %v4295_v45 = vld [vmem:[%s5291_s14 + $0x88] ss:$16 sps:$4 sm:$0xff]   ;;  %2804 = vmatpush1.bf16.msra.mxu1 %v4298_v48  ;;  %v2617_v48 = vsub.s32 2, %v5459_v21 }
 0xcc6   : > { %v2426_v53 = vpop.f32.mrb[50].mxu1  ;;  %v4301_v49 = vld [vmem:[%s5291_s14 + $0xa8] ss:$16 sps:$4 sm:$0xff]   ;;  %v4309_v52 = vld [vmem:[%s5291_s14 + $0xcc] ss:$16 sps:$4 sm:$0xff]  }
 0xcc7   : > { %v4086_v54 = vpop.f32.mrb[51].mxu1  ;;  %4232 = vrot.lane.b32.xlu0 %v4231_v50, %s4789_s5  ;;  %v4306_v50 = vld [vmem:[%s5291_s14 + $0xc4] ss:$16 sps:$4 sm:$0xff]   ;;  %v4304_v53 = vld [vmem:[%s5291_s14 + $0xc0] ss:$16 sps:$4 sm:$0xff]  }
 0xcc8   : > { %v4307_v54 = vld [vmem:[%s5291_s14 + $0xc8] ss:$16 sps:$4 sm:$0xff]   ;;  %2805 = vmatprep.subr.bf16.mxu1 %v4306_v50  ;;  %v2613_v50 = vsub.s32 1, %v5459_v21 }
 0xcc9   : > { %2806 = vmatpush1.bf16.msra.mxu1 %v4304_v53 }
 0xcca   : > { %2807 = vmatprep.subr.bf16.mxu1 %v4312_v55 }
 0xccd   : > { %2808 = vmatpush1.bf16.msra.mxu1 %v4310_v57 }
 0xd39   : > { %v4233_v61 = vpop.permute.xlu0 %4232 }
 0xd3a   : > { %v4235_v2 = vunpack.i.h.bf16 %v4233_v61  ;;  %v4234_v3 = vunpack.i.l.bf16 %v4233_v61 }
 0xd3c   : > { %v2460_v11 = vsel %vm2458_vm6, %v2457_v4, %v4235_v2  ;;  %v2459_v12 = vsel %vm2458_vm6, %v2456_v9, %v4234_v3 }
 0xd3d   : > { %v3813_v15 = vpack.c.bf16 %v2460_v11, %v2459_v12  ;;  %v3719_v11 = vld [vmem:[%s999_s11] ss:$0 sm:$0xff] }
 0xd3f   : > { %4104 = vmatmul.mubr.bf16.vlgmr.msra.gmra.mrb[24].mxu0 %v3813_v15 }
 0xd40   : > { %2837 = vmatpush1.bf16.msra.mxu0 %v4271_v24  ;;  %2868 = vmatprep.mubr.bf16.mxu0 %v4792_v60  ;;  %v4321_v24 = vld [vmem:[%s5343_s8 + $0xc8] sm:$0xff]  }
 0xd41   : > { %2838 = vmatprep.subr.bf16.mxu0 %v4279_v51  ;;  %v4324_v51 = vld [vmem:[%s5343_s8 + $0x50] sm:$0xff]  }
 0xd44   : > { %2839 = vmatpush1.bf16.msra.mxu0 %v4277_v33  ;;  %v4326_v33 = vld [vmem:[%s5343_s8 + $0x10] sm:$0xff]  }
 0xd45   : > { %2840 = vmatprep.subr.bf16.mxu0 %v4285_v37  ;;  %v4336_v37 = vld [vmem:[%s5343_s8 + $0x68] sm:$0xff]  }
 0xd48   : > { %2841 = vmatpush1.bf16.msra.mxu0 %v4283_v38  ;;  %v4338_v38 = vld [vmem:[%s5343_s8 + $0x28] sm:$0xff]  }
 0xd49   : > { %2842 = vmatprep.subr.bf16.mxu0 %v4291_v40  ;;  %v4340_v40 = vld [vmem:[%s5343_s8 + $0x70] sm:$0xff]  }
 0xd4c   : > { %2843 = vmatpush1.bf16.msra.mxu0 %v4289_v42  ;;  %v4342_v42 = vld [vmem:[%s5343_s8 + $0x30] sm:$0xff]  }
 0xd4d   : > { %2844 = vmatprep.subr.bf16.mxu0 %v4297_v44  ;;  %v4344_v44 = vld [vmem:[%s5343_s8 + $0x78] sm:$0xff]  }
 0xd50   : > { %2845 = vmatpush1.bf16.msra.mxu0 %v4295_v45  ;;  %v4346_v45 = vld [vmem:[%s5343_s8 + $0x38] sm:$0xff]  }
 0xd51   : > { %2846 = vmatprep.subr.bf16.mxu0 %v4303_v47  ;;  %v2609_v47 = vsub.s32 0, %v5459_v21 }
 0xd54   : > { %2847 = vmatpush1.bf16.msra.mxu0 %v4301_v49  ;;  %v1123_v49 = vld [vmem:[%s5341_s25] sm:$0xf] }
 0xd55   : > { %2848 = vmatprep.subr.bf16.mxu0 %v4309_v52  ;;  %v2621_v52 = vsub.s32 3, %v5459_v21  ;;  %v2610_v53 = vrot.slane %v1123_v49, %v2609_v47  ;;  %v2614_v55 = vrot.slane %v1123_v49, %v2613_v50 }
 0xd58   : > { %2849 = vmatpush1.bf16.msra.mxu0 %v4307_v54  ;;  %v2618_v54 = vrot.slane %v1123_v49, %v2617_v48 }
 0xd59   : > { %2850 = vmatprep.subr.bf16.mxu0 %v4315_v56  ;;  %v2622_v56 = vrot.slane %v1123_v49, %v2621_v52 }
 0xd5c   : > { %2851 = vmatpush1.bf16.msra.mxu0 %v4313_v58 }
 0xe12   : > { %v2557_v8 = vpop.f32.mrb[24].mxu0 }
 0xe13   : > { %v2558_v1 = vadd.f32 %v3709_v17, %v2557_v8  ;;  %v4105_v18 = vpop.f32.mrb[25].mxu0  ;;  %v3720_v8 = vld [vmem:[%s1002_s0] ss:$0 sm:$0xff] }
 0xe14   : > { %v2560_v19 = vpop.f32.mrb[26].mxu0 }
 0xe15   : > { %v5642_v22 = vadd.f32 %v4420_v20, %v2558_v1  ;;  %v2561_v23 = vadd.f32 %v3709_v17, %v2560_v19  ;;  %v4106_v25 = vpop.f32.mrb[27].mxu0 }
 0xe16   : > { %v4317_v25 = vld [vmem:[%s5343_s8 + $0xc0] sm:$0xff]  }
 0xe17   : > { %v5644_v27 = vadd.f32 %v4421_v26, %v2561_v23  ;;  %2566 = vadd.xlane.f32.xlu1 %v5642_v22  ;;  %v4316_v23 = vld [vmem:[%s5343_s8 + $0x40] sm:$0xff]   ;;  %3909 = vmatprep.subr.bf16.mxu0 %v4317_v25 }
 0xe18   : > { %v4318_v26 = vld [vmem:[%s5343_s8] sm:$0xff]   ;;  %3887 = vmatprep.subr.bf16.mxu1 %v4316_v23 }
 0xe19   : > { %2568 = vadd.xlane.f32.xlu0 %v5644_v27 }
 0xea4   : > { %v2567_v59 = vpop.xlane.xlu1 %2566 }
 0xea5   : > { %v2570_v13 = vmul.f32 0.0078125, %v2567_v59  ;;  %v4327_v59 = vld [vmem:[%s5343_s8 + $0x90] sm:$0xff]  }
 0xea6   : > { %v2569_v14 = vpop.xlane.xlu0 %2568 }
 0xea7   : > { %v5657_v34 = vsub.f32 %v5642_v22, %v2570_v13  ;;  %v2571_v35 = vmul.f32 0.0078125, %v2569_v14  ;;  %v4328_v13 = vld [vmem:[%s5343_s8 + $0x58] sm:$0xff]  }
 0xea8   : > { %v4329_v14 = vld [vmem:[%s5343_s8 + $0xd8] sm:$0xff]  }
 0xea9   : > { %v5660_v36 = vsub.f32 %v5644_v27, %v2571_v35  ;;  %v2574_v62 = vmul.f32 %v5657_v34, %v5657_v34  ;;  %v4331_v35 = vld [vmem:[%s5343_s8 + $0x98] sm:$0xff]  }
 0xeab   : > { %2576 = vadd.xlane.f32.xlu0 %v2574_v62  ;;  %v2575_v5 = vmul.f32 %v5660_v36, %v5660_v36  ;;  %v4333_v62 = vld [vmem:[%s5343_s8 + $0xe0] sm:$0xff]  }
 0xeaf   : > { %2578 = vadd.xlane.f32.xlu0 %v2575_v5  ;;  %v4334_v5 = vld [vmem:[%s5343_s8 + $0x20] sm:$0xff]  }
 0xf38   : > { %v2577_v6 = vpop.xlane.xlu0 %2576 }
 0xf39   : > { %v2580_v61 = vmul.f32 0.0078125, %v2577_v6 }
 0xf3b   : > { %v2582_v63 = vadd.f32 1e-05, %v2580_v61 }
 0xf3c   : > { %v2579_v0 = vpop.xlane.xlu0 %2578 }
 0xf3d   : > { %4384 = vrsqrt.f32 %v2582_v63  ;;  %v2581_v2 = vmul.f32 0.0078125, %v2579_v0 }
 0xf3f   : > { %v2583_v3 = vadd.f32 1e-05, %v2581_v2 }
 0xf41   : > { %4386 = vrsqrt.f32 %v2583_v3 }
 0xf47   : > { %v4385_v4 = vpop.eup %4384 }
 0xf48   : > { %v2586_v9 = vmul.f32 %v4385_v4, %v5657_v34  ;;  %v4330_v34 = vld [vmem:[%s5343_s8 + $0x18] sm:$0xff]  }
 0xf4a   : > { %v2594_v17 = vmul.f32 %v3719_v11, %v2586_v9 }
 0xf4b   : > { %v4387_v12 = vpop.eup %4386 }
 0xf4c   : > { %v2587_v15 = vmul.f32 %v4387_v12, %v5660_v36  ;;  %v2602_v18 = vadd.f32 %v3720_v8, %v2594_v17  ;;  %v4332_v36 = vld [vmem:[%s5343_s8 + $0x60] sm:$0xff]   ;;  %s5954_s8 = sld [smem:[#allocation27_spill]] }
 0xf4e   : > { %v2595_v1 = vmul.f32 %v3719_v11, %v2587_v15 }
 0xf50   : > { %v2603_v19 = vadd.f32 %v3720_v8, %v2595_v1 }
 0xf52   : > { %v3814_v20 = vpack.c.bf16 %v2603_v19, %v2602_v18  ;;  %p3799_p4 = scmp.ne.s32.totalorder %s5954_s8, 1 }
 0xf53   : > { %s5955_s3 = sld [smem:[#allocation33_spill]] (!%p3799_p4)  ;;  %vm3336_vm7 = vcmask (!%p3799_p4), 1041409  }
 0xf54   : > { %2826 = vmatmul.mubr.bf16.vlgmr.msra.gmra.mrb[52].mxu1 %v3814_v20  ;;  %2869 = vmatmul.mubr.bf16.vlgmr.msra.gmra.mrb[28].mxu0 %v3814_v20 }
 0xf55   : > { %3888 = vmatpush3.bf16.msra.mxu1 %v4318_v26  ;;  %3910 = vmatpush3.bf16.msra.mxu0 %v4319_v28 }
 0xf56   : > { %3889 = vmatprep.subr.bf16.mxu1 %v4320_v29  ;;  %3911 = vmatprep.subr.bf16.mxu0 %v4321_v24 }
 0xf59   : > { %3890 = vmatpush3.bf16.msra.mxu1 %v4322_v30  ;;  %3912 = vmatpush3.bf16.msra.mxu0 %v4323_v31 }
 0xf5a   : > { %3891 = vmatprep.subr.bf16.mxu1 %v4324_v51  ;;  %3913 = vmatprep.subr.bf16.mxu0 %v4325_v32 }
 0xf5d   : > { %3892 = vmatpush3.bf16.msra.mxu1 %v4326_v33  ;;  %3914 = vmatpush3.bf16.msra.mxu0 %v4327_v59 }
 0xf5e   : > { %3893 = vmatprep.subr.bf16.mxu1 %v4328_v13  ;;  %3915 = vmatprep.subr.bf16.mxu0 %v4329_v14 }
 0xf61   : > { %3894 = vmatpush3.bf16.msra.mxu1 %v4330_v34  ;;  %3916 = vmatpush3.bf16.msra.mxu0 %v4331_v35 }
 0xf62   : > { %3895 = vmatprep.subr.bf16.mxu1 %v4332_v36  ;;  %3917 = vmatprep.subr.bf16.mxu0 %v4333_v62 }
 0xf65   : > { %3896 = vmatpush3.bf16.msra.mxu1 %v4334_v5  ;;  %3918 = vmatpush3.bf16.msra.mxu0 %v4335_v10 }
 0xf66   : > { %3897 = vmatprep.subr.bf16.mxu1 %v4336_v37  ;;  %3919 = vmatprep.subr.bf16.mxu0 %v4337_v16 }
 0xf69   : > { %3898 = vmatpush3.bf16.msra.mxu1 %v4338_v38  ;;  %3920 = vmatpush3.bf16.msra.mxu0 %v4339_v39 }
 0xf6a   : > { %3899 = vmatprep.subr.bf16.mxu1 %v4340_v40  ;;  %3921 = vmatprep.subr.bf16.mxu0 %v4341_v41 }
 0xf6d   : > { %3900 = vmatpush3.bf16.msra.mxu1 %v4342_v42  ;;  %3922 = vmatpush3.bf16.msra.mxu0 %v4343_v43 }
 0xf6e   : > { %3901 = vmatprep.subr.bf16.mxu1 %v4344_v44  ;;  %3923 = vmatprep.subr.bf16.mxu0 %v4345_v7 }
 0xf71   : > { %3902 = vmatpush3.bf16.msra.mxu1 %v4346_v45  ;;  %3924 = vmatpush3.bf16.msra.mxu0 %v4347_v46 }
0x1027   : > { %v2827_v57 = vpop.f32.mrb[52].mxu1  ;;  %v2870_v58 = vpop.f32.mrb[28].mxu0 }
0x1028   : > { %v5743_v60 = vadd.f32 %v2827_v57, %v2610_v53  ;;  %v5745_v6 = vadd.f32 %v2870_v58, %v2618_v54  ;;  %v2829_v61 = vpop.f32.mrb[53].mxu1  ;;  %v2872_v63 = vpop.f32.mrb[29].mxu0 }
0x1029   : > { %v5747_v0 = vadd.f32 %v2829_v61, %v2614_v55  ;;  %v5749_v2 = vadd.f32 %v2872_v63, %v2622_v56  ;;  %v2831_v3 = vpop.f32.mrb[54].mxu1  ;;  %v2874_v4 = vpop.f32.mrb[30].mxu0 }
0x102a   : > { %v3754_v9 = vmul.f32 -1.702, %v5743_v60  ;;  %v3756_v11 = vmul.f32 -1.702, %v5745_v6  ;;  %v2832_v12 = vadd.f32 %v2831_v3, %v2610_v53  ;;  %v2875_v15 = vadd.f32 %v2874_v4, %v2618_v54  ;;  %v2833_v17 = vpop.f32.mrb[55].mxu1  ;;  %v2876_v8 = vpop.f32.mrb[31].mxu0 }
0x102b   : > { %v3755_v1 = vmul.f32 -1.702, %v5747_v0  ;;  %v3757_v18 = vmul.f32 -1.702, %v5749_v2  ;;  %v2834_v19 = vadd.f32 %v2833_v17, %v2614_v55  ;;  %v2877_v20 = vadd.f32 %v2876_v8, %v2622_v56 }
0x102c   : > { %v2895_v23 = vmul.f32 1.442695, %v3754_v9  ;;  %v2899_v25 = vmul.f32 1.442695, %v3756_v11  ;;  %v3758_v26 = vmul.f32 -1.702, %v2832_v12 }
0x102d   : > { %v2897_v28 = vmul.f32 1.442695, %v3755_v1  ;;  %v2901_v29 = vmul.f32 1.442695, %v3757_v18  ;;  %v3760_v24 = vmul.f32 -1.702, %v2875_v15 }
0x102e   : > { %4388 = vpow2.f32 %v2895_v23  ;;  %v2903_v30 = vmul.f32 1.442695, %v3758_v26  ;;  %v3759_v31 = vmul.f32 -1.702, %v2834_v19  ;;  %v3761_v51 = vmul.f32 -1.702, %v2877_v20 }
0x102f   : > { %4390 = vpow2.f32 %v2899_v25  ;;  %v2907_v32 = vmul.f32 1.442695, %v3760_v24  ;;  %v3798_v26 = vld [vmem:[%s1009_s19] ss:$0 sm:$0xff] }
0x1030   : > { %4392 = vpow2.f32 %v2897_v28  ;;  %v2905_v33 = vmul.f32 1.442695, %v3759_v31  ;;  %v2909_v59 = vmul.f32 1.442695, %v3761_v51  ;;  %v3305_v51 = vld [vmem:[%s5955_s3] sm:$0x3] (!%p3799_p4) }
0x1031   : > { %4394 = vpow2.f32 %v2901_v29 }
0x1032   : > { %4396 = vpow2.f32 %v2903_v30 }
0x1033   : > { %4398 = vpow2.f32 %v2907_v32  ;;  %v3309_v32 = vrot.slane (!%p3799_p4), %v3305_v51, %v2609_v47 }
0x1034   : > { %4400 = vpow2.f32 %v2905_v33 }
0x1035   : > { %4402 = vpow2.f32 %v2909_v59 }
0x1038   : > { %v4389_v13 = vpop.eup %4388 }
0x1039   : > { %v4391_v14 = vpop.eup %4390  ;;  %v2911_v34 = vadd.f32 1.0, %v4389_v13 }
0x103a   : > { %v4393_v35 = vpop.eup %4392  ;;  %v2913_v36 = vadd.f32 1.0, %v4391_v14 }
0x103b   : > { %v4395_v62 = vpop.eup %4394  ;;  %4404 = vrcp.f32 %v2911_v34  ;;  %v2912_v5 = vadd.f32 1.0, %v4393_v35 }
0x103c   : > { %v4397_v10 = vpop.eup %4396  ;;  %4406 = vrcp.f32 %v2913_v36  ;;  %v2914_v37 = vadd.f32 1.0, %v4395_v62  ;;  %v3316_v36 = vrot.slane (!%p3799_p4), %v3305_v51, %v2613_v50 }
0x103d   : > { %v4399_v16 = vpop.eup %4398  ;;  %4408 = vrcp.f32 %v2912_v5  ;;  %v2915_v38 = vadd.f32 1.0, %v4397_v10 }
0x103e   : > { %v4401_v39 = vpop.eup %4400  ;;  %4410 = vrcp.f32 %v2914_v37  ;;  %v2917_v40 = vadd.f32 1.0, %v4399_v16 }
0x103f   : > { %v4403_v41 = vpop.eup %4402  ;;  %4412 = vrcp.f32 %v2915_v38  ;;  %v2916_v42 = vadd.f32 1.0, %v4401_v39  ;;  %v3800_v39 = vld [vmem:[#allocation6] ss:$0 sm:$0xff] (!%p3799_p4) }
0x1040   : > { %4414 = vrcp.f32 %v2917_v40  ;;  %v2918_v43 = vadd.f32 1.0, %v4403_v41  ;;  %v3801_v41 = vld [vmem:[#allocation8] ss:$0 sm:$0xff] (!%p3799_p4) }
0x1041   : > { %4416 = vrcp.f32 %v2916_v42 }
0x1042   : > { %4418 = vrcp.f32 %v2918_v43 }
0x1045   : > { %v4405_v44 = vpop.eup %4404 }
0x1046   : > { %v4407_v7 = vpop.eup %4406  ;;  %v2935_v52 = vmul.f32 %v4405_v44, %v5743_v60 }
0x1047   : > { %v4409_v45 = vpop.eup %4408  ;;  %v2937_v55 = vmul.f32 %v4407_v7, %v5745_v6 }
0x1048   : > { %v4411_v46 = vpop.eup %4410  ;;  %v2936_v58 = vmul.f32 %v4409_v45, %v5747_v0 }
0x1049   : > { %v4413_v48 = vpop.eup %4412  ;;  %v2938_v3 = vmul.f32 %v4411_v46, %v5749_v2 }
0x104a   : > { %v4415_v49 = vpop.eup %4414  ;;  %v2939_v53 = vmul.f32 %v4413_v48, %v2832_v12 }
0x104b   : > { %v4417_v54 = vpop.eup %4416  ;;  %v2941_v56 = vmul.f32 %v4415_v49, %v2875_v15 }
0x104c   : > { %v4419_v57 = vpop.eup %4418  ;;  %v3815_v61 = vpack.c.bf16 %v2939_v53, %v2935_v52  ;;  %v2940_v63 = vmul.f32 %v4417_v54, %v2834_v19 }
0x104d   : > { %v3817_v4 = vpack.c.bf16 %v2941_v56, %v2937_v55  ;;  %v2942_v9 = vmul.f32 %v4419_v57, %v2877_v20 }
0x104e   : > { %v3816_v11 = vpack.c.bf16 %v2940_v63, %v2936_v58 }
0x104f   : > { %v3818_v17 = vpack.c.bf16 %v2942_v9, %v2938_v3 }
0x1050   : > { %3199 = vmatprep.mubr.bf16.mxu1 %v3816_v11 }
0x1051   : > { %3240 = vmatprep.mubr.bf16.mxu0 %v3818_v17  ;;  %3200 = vmatmul.mubr.bf16.vlgmr.msra.gmra.mrb[56].mxu1 %v3815_v61 }
0x1052   : > { %3241 = vmatmul.mubr.bf16.vlgmr.msra.gmra.mrb[32].mxu0 %v3817_v4 }
0x1124   : > { %v3903_v60 = vpop.f32.mrb[56].mxu1 }
0x1125   : > { %v3925_v12 = vpop.f32.mrb[32].mxu0  ;;  %v3904_v6 = vpop.f32.mrb[57].mxu1 }
0x1126   : > { %v3905_v15 = vadd.f32 %v3904_v6, %v3903_v60  ;;  %v3926_v8 = vpop.f32.mrb[33].mxu0  ;;  %v3906_v1 = vpop.f32.mrb[58].mxu1 }
0x1127   : > { %v3927_v0 = vadd.f32 %v3926_v8, %v3925_v12  ;;  %v3928_v18 = vpop.f32.mrb[34].mxu0  ;;  %v3907_v19 = vpop.f32.mrb[59].mxu1 }
0x1128   : > { %v3908_v23 = vadd.f32 %v3907_v19, %v3906_v1  ;;  %v3929_v2 = vpop.f32.mrb[35].mxu0 }
0x1129   : > { %v3243_v25 = vadd.f32 %v3927_v0, %v3905_v15  ;;  %v3930_v20 = vadd.f32 %v3929_v2, %v3928_v18 }
0x112b   : > { %v3249_v28 = vadd.f32 %v3243_v25, %v5642_v22  ;;  %v3246_v29 = vadd.f32 %v3930_v20, %v3908_v23  ;;  %3264 = sbr.rel (%p3799_p4) target bundleno = 4730 (0x127a), region = 144 }
0x112d   : > { %v3257_v24 = vadd.f32 %v3798_v26, %v3249_v28  ;;  %v3250_v30 = vadd.f32 %v3246_v29, %v5644_v27 }
0x112f   : > { %3259 = vst [vmem:[#allocation2] sm:$0xff] %v3257_v24  ;;  %v3258_v31 = vadd.f32 %v3798_v26, %v3250_v30  ;;  %3267 = vadd.xlane.f32.xlu0 (!%p3799_p4), %v3257_v24 }
0x1131   : > { %3260 = vst [vmem:[#allocation2 + $0x8] sm:$0xff] %v3258_v31 }
0x1133   : > { %3269 = vadd.xlane.f32.xlu0 %v3258_v31 }
0x1149   : > { %3311 = vbcast.lane.b32.xlu0 %v3309_v32, 256 }
0x11bc   : > { %v3268_v22 = vpop.xlane.xlu0 %3267 }
0x11bd   : > { %v3271_v33 = vmul.f32 0.0078125, %v3268_v22 }
0x11bf   : > { %v3273_v59 = vsub.f32 %v3257_v24, %v3271_v33 }
0x11c0   : > { %v3270_v27 = vpop.xlane.xlu0 %3269 }
0x11c1   : > { %v3272_v13 = vmul.f32 0.0078125, %v3270_v27  ;;  %v3275_v14 = vmul.f32 %v3273_v59, %v3273_v59 }
0x11c3   : > { %v3274_v34 = vsub.f32 %v3258_v31, %v3272_v13  ;;  %3277 = vadd.xlane.f32.xlu1 %v3275_v14 }
0x11c4   : > { %v3312_v44 = vpop.permute.xlu0 %3311 }
0x11c5   : > { %v3276_v35 = vmul.f32 %v3274_v34, %v3274_v34 }
0x11c7   : > { %3279 = vadd.xlane.f32.xlu1 %v3276_v35 }
0x11d8   : > { %3318 = vbcast.lane.b32.xlu1 %v3316_v36, 256 }
0x1250   : > { %v3278_v62 = vpop.xlane.xlu1 %3277 }
0x1251   : > { %v3281_v5 = vmul.f32 0.0078125, %v3278_v62 }
0x1253   : > { %v3283_v10 = vadd.f32 1e-05, %v3281_v5 }
0x1254   : > { %v3280_v37 = vpop.xlane.xlu1 %3279 }
0x1255   : > { %4422 = vrsqrt.f32 %v3283_v10  ;;  %v3282_v47 = vmul.f32 0.0078125, %v3280_v37 }
0x1257   : > { %v3284_v16 = vadd.f32 1e-05, %v3282_v47 }
0x1258   : > { %v3319_v46 = vpop.permute.xlu1 %3318 }
0x1259   : > { %4424 = vrsqrt.f32 %v3284_v16 }
0x125f   : > { %v4423_v38 = vpop.eup %4422 }
0x1260   : > { %v3287_v40 = vmul.f32 %v4423_v38, %v3273_v59 }
0x1262   : > { %v3295_v42 = vmul.f32 %v3800_v39, %v3287_v40 }
0x1263   : > { %v4425_v43 = vpop.eup %4424 }
0x1264   : > { %v3303_v7 = vadd.f32 %v3801_v41, %v3295_v42  ;;  %v3288_v45 = vmul.f32 %v4425_v43, %v3274_v34 }
0x1266   : > { %v3320_v21 = vmul.f32 %v3312_v44, %v3303_v7  ;;  %v3296_v50 = vmul.f32 %v3800_v39, %v3288_v45 }
0x1268   : > { %v3322_v48 = vrot.slane %v3320_v21, 4  ;;  %v3304_v49 = vadd.f32 %v3801_v41, %v3296_v50 }
0x126a   : > { %v3323_v52 = vadd.f32 %v3322_v48, %v3320_v21  ;;  %v3321_v53 = vmul.f32 %v3319_v46, %v3304_v49 }
0x126c   : > { %v3324_v54 = vrot.slane %v3323_v52, 2  ;;  %v3328_v55 = vrot.slane %v3321_v53, 4 }
0x126e   : > { %v3325_v56 = vadd.f32 %v3324_v54, %v3323_v52  ;;  %v3329_v57 = vadd.f32 %v3328_v55, %v3321_v53 }
0x1270   : > { %v3330_v58 = vrot.slane %v3329_v57, 2  ;;  %v3326_v61 = vrot.slane %v3325_v56, 1 }
0x1272   : > { %v3331_v63 = vadd.f32 %v3330_v58, %v3329_v57  ;;  %v3327_v4 = vadd.f32 %v3326_v61, %v3325_v56 }
0x1274   : > { %v3332_v3 = vrot.slane %v3331_v63, 1 }
0x1276   : > { %v3333_v9 = vadd.f32 %v3332_v3, %v3331_v63 }
0x1278   : > { %v3337_v11 = vsel %vm3336_vm7, %v3333_v9, %v3327_v4 }
0x1279   : > { %3339 = vst [vmem:[#allocation18] sm:$0x3] %v3337_v11 }
0x127a PF: > { %s5956_s16 = sld [smem:[#allocation27_spill]]  ;;  %s4793_s19 = smov [#allocation18]  }
0x127b   : > { %s3347_s20 = sshll.u32 %s4793_s19, 4  ;;  %s3348_s20 = int_to_ptr.vmem [resolvable:$true] %s3347_s20 }
0x127c   : > { %s4690_s15 = scalar_lea.vmem %s3348_s20, 32  ;;  %p4697_p5 = scmp.lt.s32.totalorder %s3348_s20, %s3348_s20 }
0x127d   : > { %p4691_p2 = scmp.ne.s32.totalorder %s3348_s20, %s4690_s15  ;;  %p4698_p10 = scmp.lt.s32.totalorder %s4690_s15, %s4690_s15 }
0x127f   : > { %p4699_p7 = por %p4698_p10, %p4697_p5 }
0x1280   : > { %p4171_p6 = scmp.eq.s32.totalorder %s5956_s16, 1 }
0x1282   : > { %p4692_p0 = pnand %p4691_p2, %p4171_p6 }
0x1284   : > { %p4693_p12 = pneg %p4692_p0 }
0x1286   : > { %p4700_p9 = pnand %p4699_p7, %p4693_p12 }
0x1288   : > { %4703 = shalt.err (!%p4700_p9)
}
0x1289   : > { %s5957_s26 = sld [smem:[#allocation51_spill]] }
0x128f   : > { %s4704_s21 = scalar_lea.hbm %s5957_s26, 32 }
0x1290   : > { %p4705_p8 = scmp.ne.s32.totalorder %s5957_s26, %s4704_s21  ;;  %p4710_p3 = scmp.lt.u32.totalorder %s4704_s21, %s5957_s26 }
0x1292   : > { %p4706_p11 = pnand %p4705_p8, %p4171_p6 }
0x1294   : > { %p4707_p1 = pneg %p4706_p11 }
0x1296   : > { %p4712_p13 = pnand %p4710_p3, %p4707_p1 }
0x1298   : > { %4715 = shalt.err (!%p4712_p13)
}
0x1299   : > { %4132 = dma.vmem_to_hbm [thread:$0]  (%p4171_p6), %s3348_s20, 32, %s5957_s26, [#allocation5]  }
0x129a   : > { %4753 = dma.done.wait (%p4171_p6), [#allocation5], 32  }
0x129b   : > { %4755 = vsyncadd (%p4171_p6), [#allocation5], 4294967264 }
0x129c PF: > { %s5958_s24 = sld [smem:[#allocation28_spill]]  ;;  %s5959_s1 = sld [smem:[#allocation25_spill]] }
0x129d   : > { %s5960_s22 = sld [smem:[#allocation26_spill]]  ;;  %s5961_s23 = sld [smem:[#allocation29_spill]] }
0x12a2   : > { %p39_p4 = scmp.ge.s32.totalorder %s5958_s24, 4  }
0x12a4   :  { %41 = sbr.rel (!%p39_p4) target bundleno = 31 (0x1f), region = 247 }
0x12ab   :  { %3360 = vsyncpa [#allocation4], 1 }
0x12ac   :  { %3362 = vsyncpa [#allocation4 + $0x1], 1 }
0x12ad   :  { %3363 = vsyncpa [#allocation7], 1 }
0x12ae   :  { %3364 = vsyncpa [#allocation10], 1 }
0x12af   :  { %3366 = vsyncpa [#allocation10 + $0x1], 1 }
0x12b0   :  { %3367 = vsyncpa [#allocation13], 1 }
0x12b1   :  { %3369 = vsyncpa [#allocation13 + $0x1], 1 }
0x12b2   :  { %3370 = vsyncpa [#allocation16], 1 }
0x12b3   :  { %3372 = vsyncpa [#allocation16 + $0x1], 1 }
0x12b4   :  { %3373 = vsyncpa [#allocation5], 1 }
0x12b5   :  { %3375 = vsyncpa [#allocation5 + $0x1], 1 }

</bundles_post_ra>
